<compile_context>
chip_gen: v6e
topology: v6e:2x2x1
jax: 0.10.0
libtpu: 0.0.40
codegen_flags: <defaults>
</compile_context>

<pallas_src>
import jax
import jax.numpy as jnp
import numpy as np
from jax.experimental import pallas as pl
from jax.experimental.pallas import tpu as pltpu


# ---------------------------------------------------------------------------
# Single fused Pallas kernel: 4 chained channel-major (W @ X + b) -> ReLU
# ---------------------------------------------------------------------------
def _fused_convnet_kernel(p_ref, w1_ref, b1_ref, w2_ref, b2_ref,
                          w3_ref, b3_ref, w4_ref, b4_ref, o_ref):
    # Every stage: h(cout, tm) = relu(W(cout, cin) @ h(cin, tm) + b(cout, 1)).
    # conv1: 3x3 grouped conv as one block-diagonal im2col matmul, + ReLU
    h = jnp.dot(w1_ref[...], p_ref[...], preferred_element_type=jnp.float32)
    h = jnp.maximum(h + b1_ref[...], 0.0)
    # conv2_2 (1x1) + ReLU
    h = jnp.dot(w2_ref[...], h.astype(w2_ref.dtype),
                preferred_element_type=jnp.float32)
    h = jnp.maximum(h + b2_ref[...], 0.0)
    # conv3 (1x1, interior pixels only) + ReLU
    h = jnp.dot(w3_ref[...], h.astype(w3_ref.dtype),
                preferred_element_type=jnp.float32)
    h = jnp.maximum(h + b3_ref[...], 0.0)
    # conv4 (1x1) + ReLU
    h = jnp.dot(w4_ref[...], h.astype(w4_ref.dtype),
                preferred_element_type=jnp.float32)
    h = jnp.maximum(h + b4_ref[...], 0.0)
    o_ref[...] = h.astype(o_ref.dtype)


def fused_forward_cols(patches_t, w1t, b1, w2t, b2, w3t, b3, w4t, b4, *, tm=256):
    """Runs the whole conv chain channel-major on (36, M) columns -> (64, M)."""
    K1, M = patches_t.shape
    c1, c2, c3, co = w1t.shape[0], w2t.shape[0], w3t.shape[0], w4t.shape[0]
    tm = min(tm, M)
    full = lambda i: (0, 0)   # weights/biases: same block for every tile

    flops = 2 * M * (K1 * c1 + c1 * c2 + c2 * c3 + c3 * co)
    bytes_accessed = (
        patches_t.size * patches_t.dtype.itemsize
        + sum(w.size * w.dtype.itemsize for w in (w1t, w2t, w3t, w4t))
        + sum(b.size * b.dtype.itemsize for b in (b1, b2, b3, b4))
        + M * co * 4)

    out = pl.pallas_call(
        _fused_convnet_kernel,
        out_shape=jax.ShapeDtypeStruct((co, M), jnp.float32),
        grid=(pl.cdiv(M, tm),),
        in_specs=[
            pl.BlockSpec((K1, tm), lambda i: (0, i)),   # activation column tile
            pl.BlockSpec(w1t.shape, full),
            pl.BlockSpec(b1.shape, full),
            pl.BlockSpec(w2t.shape, full),
            pl.BlockSpec(b2.shape, full),
            pl.BlockSpec(w3t.shape, full),
            pl.BlockSpec(b3.shape, full),
            pl.BlockSpec(w4t.shape, full),
            pl.BlockSpec(b4.shape, full),
        ],
        # co=64 on sublanes, tm=256 on lanes -> lane-dense unmasked stores.
        out_specs=pl.BlockSpec((co, tm), lambda i: (0, i)),
        compiler_params=pltpu.CompilerParams(
            dimension_semantics=("parallel",)),   # 2 tiles -> both v7x TCs busy
        cost_estimate=pl.CostEstimate(flops=flops, transcendentals=0,
                                      bytes_accessed=bytes_accessed),
    )(patches_t, w1t, b1, w2t, b2, w3t, b3, w4t, b4)
    return out


# ---------------------------------------------------------------------------
# One-time constant weight preparation (kept OUT of the per-call jit graph)
# ---------------------------------------------------------------------------
def prepare_params(params, cin, groups=2):
    f32 = jnp.float32
    cout1 = params["w1"].shape[0]
    cog, cig = cout1 // groups, cin // groups

    # conv1 as a block-diagonal channel-major matmul weight (cout1, 9*cin);
    # feature index = tap*cin + c  (tap-major, channel-minor).
    w1t = jnp.zeros((cout1, 9, cin), f32)
    for g in range(groups):
        wg = params["w1"][g * cog:(g + 1) * cog]                      # (cog, cig, 3, 3)
        wg = jnp.transpose(wg.reshape(cog, cig, 9), (0, 2, 1))        # (cog, 9, cig)
        w1t = w1t.at[g * cog:(g + 1) * cog, :, g * cig:(g + 1) * cig].set(wg)
    w1t = w1t.reshape(cout1, 9 * cin)

    # 1x1 convs: the (cout, cin) weight slice IS the channel-major matmul form.
    w2t = params["w2_2"][:, :, 0, 0]      # (256, 128)  (conv2_1 is dead -> skipped)
    w3t = params["w3"][:, :, 0, 0]        # (128, 256)
    w4t = params["w4"][:, :, 0, 0]        # (64, 128)

    col = lambda b: b.reshape(-1, 1).astype(f32)
    dt = jnp.bfloat16

    # conv3's zero-padded border pixels reduce to a constant 64-vector:
    # relu(w4 @ relu(b3) + b4)   (exact: pad value is 0 and conv3/4 are 1x1).
    border = jnp.maximum(w4t @ jnp.maximum(params["b3"], 0.0) + params["b4"], 0.0)

    return dict(
        w1t=w1t.astype(dt), b1=col(params["b1"]),
        w2t=w2t.astype(dt), b2=col(params["b2_2"]),
        w3t=w3t.astype(dt), b3=col(params["b3"]),
        w4t=w4t.astype(dt), b4=col(params["b4"]),
        border=border.astype(f32),
    )


# ---------------------------------------------------------------------------
# Model forward (glue: im2col, border fill, layout; all math in Pallas)
# ---------------------------------------------------------------------------
@jax.jit
def forward_pallas(x_nchw, prep):
    N, C, H, W = x_nchw.shape
    Hp, Wp = H + 2, W + 2

    # im2col for the 3x3 / pad=1 conv1, built channel-major: (9*C, N*H*W)
    xp = jnp.pad(x_nchw, ((0, 0), (0, 0), (1, 1), (1, 1)))
    taps = jnp.stack([xp[:, :, dh:dh + H, dw:dw + W]
                      for dh in range(3) for dw in range(3)], axis=0)  # (9,N,C,H,W)
    patches_t = jnp.transpose(taps, (0, 2, 1, 3, 4)).reshape(9 * C, N * H * W)

    # one fused Pallas kernel over all interior (non-padded) pixels
    interior = fused_forward_cols(
        patches_t.astype(jnp.bfloat16),
        prep["w1t"], prep["b1"], prep["w2t"], prep["b2"],
        prep["w3t"], prep["b3"], prep["w4t"], prep["b4"])              # (64, N*H*W)
    co = interior.shape[0]
    interior = jnp.transpose(interior.reshape(co, N, H, W), (1, 0, 2, 3))  # NCHW

    # conv3's zero-padded border ring is a per-channel constant; XLA fuses the
    # broadcast into the dynamic-update-slice (single output write).
    out = jnp.broadcast_to(prep["border"][None, :, None, None], (N, co, Hp, Wp))
    out = out.at[:, :, 1:H + 1, 1:W + 1].set(interior)
    return out


# ---------------------------------------------------------------------------
# Pure-JAX reference (lax.conv, f32) to validate the Pallas path
# ---------------------------------------------------------------------------
def _conv_ref(x, w, b, pad, groups=1):
    out = jax.lax.conv_general_dilated(
        x, w, window_strides=(1, 1),
        padding=[(pad, pad), (pad, pad)],
        dimension_numbers=("NCHW", "OIHW", "NCHW"),
        feature_group_count=groups,
        precision=jax.lax.Precision.HIGHEST)
    return out + b[None, :, None, None]


def forward_reference(x, p):
    v2 = jax.nn.relu(_conv_ref(x, p["w1"], p["b1"], pad=1, groups=2))
    # conv2_1 result is overwritten in the PyTorch forward -> no effect
    v3 = jax.nn.relu(_conv_ref(v2, p["w2_2"], p["b2_2"], pad=0))
    v4 = jax.nn.relu(_conv_ref(v3, p["w3"], p["b3"], pad=1))
    v4 = jax.nn.relu(_conv_ref(v4, p["w4"], p["b4"], pad=0))
    return v4


# ---------------------------------------------------------------------------
# Deterministic parameter init (PyTorch-like uniform(-1/sqrt(fan_in), ...))
# ---------------------------------------------------------------------------
def init_params(key, cin):
    def conv_init(key, cout, cin_eff, k):
        kw_, kb_ = jax.random.split(key)
        bound = 1.0 / np.sqrt(cin_eff * k * k)
        w = jax.random.uniform(kw_, (cout, cin_eff, k, k), jnp.float32, -bound, bound)
        b = jax.random.uniform(kb_, (cout,), jnp.float32, -bound, bound)
        return w, b

    keys = jax.random.split(key, 5)
    p = {}
    p["w1"], p["b1"] = conv_init(keys[0], 128, cin // 2, 3)      # grouped conv
    p["w2_1"], p["b2_1"] = conv_init(keys[1], 256, 128, 1)       # dead branch
    p["w2_2"], p["b2_2"] = conv_init(keys[2], 256, 128, 1)
    p["w3"], p["b3"] = conv_init(keys[3], 128, 256, 1)
    p["w4"], p["b4"] = conv_init(keys[4], 64, 128, 1)
    return p


if __name__ == "__main__":
    key = jax.random.PRNGKey(0)
    k_x, k_p = jax.random.split(key)

    N, C, H, W = 2, 4, 16, 16   # small shapes; C=4 so groups=2 is valid
    x = jax.random.normal(k_x, (N, C, H, W), jnp.float32)
    params = init_params(k_p, C)
    prep = prepare_params(params, C)   # one-time constant weight prep (hoisted)

    out = jax.block_until_ready(forward_pallas(x, prep))
    ref = jax.block_until_ready(forward_reference(x, params))

    assert out.shape == (N, 64, H + 2, W + 2), out.shape
    # matmuls run with bf16 operands / f32 accumulation -> 2e-2 tolerance
    np.testing.assert_allclose(np.asarray(out), np.asarray(ref),
                               rtol=2e-2, atol=2e-2)

    print("KERNEL_OK")
</pallas_src>

<mosaic_0001>
module attributes {stable_mosaic.version = 11 : i64} {
  func.func @_fused_convnet_kernel(%arg0: i32, %arg1: memref<36x256xbf16, #tpu.memory_space<vmem>>, %arg2: memref<128x36xbf16, #tpu.memory_space<vmem>>, %arg3: memref<128x1xf32, #tpu.memory_space<vmem>>, %arg4: memref<256x128xbf16, #tpu.memory_space<vmem>>, %arg5: memref<256x1xf32, #tpu.memory_space<vmem>>, %arg6: memref<128x256xbf16, #tpu.memory_space<vmem>>, %arg7: memref<128x1xf32, #tpu.memory_space<vmem>>, %arg8: memref<64x128xbf16, #tpu.memory_space<vmem>>, %arg9: memref<64x1xf32, #tpu.memory_space<vmem>>, %arg10: memref<64x256xf32, #tpu.memory_space<vmem>>) attributes {dimension_semantics = [#tpu.dimension_semantics<parallel>], iteration_bounds = array<i64: 2>, scalar_prefetch = 0 : i64, scratch_operands = 0 : i64, tpu.core_type = #tpu.core_type<tc>, window_params = [{transform_indices = @transform_0, window_bounds = array<i64: 36, 256>}, {pipeline_mode = #tpu.pipeline_mode<synchronous>, transform_indices = @transform_1, window_bounds = array<i64: 128, 36>}, {pipeline_mode = #tpu.pipeline_mode<synchronous>, transform_indices = @transform_2, window_bounds = array<i64: 128, 1>}, {pipeline_mode = #tpu.pipeline_mode<synchronous>, transform_indices = @transform_3, window_bounds = array<i64: 256, 128>}, {pipeline_mode = #tpu.pipeline_mode<synchronous>, transform_indices = @transform_4, window_bounds = array<i64: 256, 1>}, {pipeline_mode = #tpu.pipeline_mode<synchronous>, transform_indices = @transform_5, window_bounds = array<i64: 128, 256>}, {pipeline_mode = #tpu.pipeline_mode<synchronous>, transform_indices = @transform_6, window_bounds = array<i64: 128, 1>}, {pipeline_mode = #tpu.pipeline_mode<synchronous>, transform_indices = @transform_7, window_bounds = array<i64: 64, 128>}, {pipeline_mode = #tpu.pipeline_mode<synchronous>, transform_indices = @transform_8, window_bounds = array<i64: 64, 1>}, {transform_indices = @transform_9, window_bounds = array<i64: 64, 256>}]} {
    %c0 = arith.constant 0 : index
    %c0_0 = arith.constant 0 : index
    %0 = vector.load %arg2[%c0, %c0_0] : memref<128x36xbf16, #tpu.memory_space<vmem>>, vector<128x36xbf16>
    %c0_1 = arith.constant 0 : index
    %c0_2 = arith.constant 0 : index
    %1 = vector.load %arg1[%c0_1, %c0_2] : memref<36x256xbf16, #tpu.memory_space<vmem>>, vector<36x256xbf16>
    %cst = arith.constant dense<0.000000e+00> : vector<128x256xf32>
    %2 = tpu.matmul %0, %1, %cst {dimension_numbers = #tpu.dot_dimension_numbers<[1], [0], [0], [1], [0, 0, 1, 1], [], []>} : vector<128x36xbf16>, vector<36x256xbf16>, vector<128x256xf32> -> vector<128x256xf32>
    %c0_3 = arith.constant 0 : index
    %c0_4 = arith.constant 0 : index
    %3 = vector.load %arg3[%c0_3, %c0_4] : memref<128x1xf32, #tpu.memory_space<vmem>>, vector<128x1xf32>
    %4 = vector.broadcast %3 : vector<128x1xf32> to vector<128x256xf32>
    %5 = arith.addf %2, %4 : vector<128x256xf32>
    %cst_5 = arith.constant 0.000000e+00 : f32
    %6 = vector.broadcast %cst_5 : f32 to vector<128x256xf32>
    %7 = arith.maximumf %5, %6 : vector<128x256xf32>
    %c0_6 = arith.constant 0 : index
    %c0_7 = arith.constant 0 : index
    %8 = vector.load %arg4[%c0_6, %c0_7] : memref<256x128xbf16, #tpu.memory_space<vmem>>, vector<256x128xbf16>
    %9 = arith.truncf %7 : vector<128x256xf32> to vector<128x256xbf16>
    %cst_8 = arith.constant dense<0.000000e+00> : vector<256x256xf32>
    %10 = tpu.matmul %8, %9, %cst_8 {dimension_numbers = #tpu.dot_dimension_numbers<[1], [0], [0], [1], [0, 0, 1, 1], [], []>} : vector<256x128xbf16>, vector<128x256xbf16>, vector<256x256xf32> -> vector<256x256xf32>
    %c0_9 = arith.constant 0 : index
    %c0_10 = arith.constant 0 : index
    %11 = vector.load %arg5[%c0_9, %c0_10] : memref<256x1xf32, #tpu.memory_space<vmem>>, vector<256x1xf32>
    %12 = vector.broadcast %11 : vector<256x1xf32> to vector<256x256xf32>
    %13 = arith.addf %10, %12 : vector<256x256xf32>
    %cst_11 = arith.constant 0.000000e+00 : f32
    %14 = vector.broadcast %cst_11 : f32 to vector<256x256xf32>
    %15 = arith.maximumf %13, %14 : vector<256x256xf32>
    %c0_12 = arith.constant 0 : index
    %c0_13 = arith.constant 0 : index
    %16 = vector.load %arg6[%c0_12, %c0_13] : memref<128x256xbf16, #tpu.memory_space<vmem>>, vector<128x256xbf16>
    %17 = arith.truncf %15 : vector<256x256xf32> to vector<256x256xbf16>
    %cst_14 = arith.constant dense<0.000000e+00> : vector<128x256xf32>
    %18 = tpu.matmul %16, %17, %cst_14 {dimension_numbers = #tpu.dot_dimension_numbers<[1], [0], [0], [1], [0, 0, 1, 1], [], []>} : vector<128x256xbf16>, vector<256x256xbf16>, vector<128x256xf32> -> vector<128x256xf32>
    %c0_15 = arith.constant 0 : index
    %c0_16 = arith.constant 0 : index
    %19 = vector.load %arg7[%c0_15, %c0_16] : memref<128x1xf32, #tpu.memory_space<vmem>>, vector<128x1xf32>
    %20 = vector.broadcast %19 : vector<128x1xf32> to vector<128x256xf32>
    %21 = arith.addf %18, %20 : vector<128x256xf32>
    %cst_17 = arith.constant 0.000000e+00 : f32
    %22 = vector.broadcast %cst_17 : f32 to vector<128x256xf32>
    %23 = arith.maximumf %21, %22 : vector<128x256xf32>
    %c0_18 = arith.constant 0 : index
    %c0_19 = arith.constant 0 : index
    %24 = vector.load %arg8[%c0_18, %c0_19] : memref<64x128xbf16, #tpu.memory_space<vmem>>, vector<64x128xbf16>
    %25 = arith.truncf %23 : vector<128x256xf32> to vector<128x256xbf16>
    %cst_20 = arith.constant dense<0.000000e+00> : vector<64x256xf32>
    %26 = tpu.matmul %24, %25, %cst_20 {dimension_numbers = #tpu.dot_dimension_numbers<[1], [0], [0], [1], [0, 0, 1, 1], [], []>} : vector<64x128xbf16>, vector<128x256xbf16>, vector<64x256xf32> -> vector<64x256xf32>
    %c0_21 = arith.constant 0 : index
    %c0_22 = arith.constant 0 : index
    %27 = vector.load %arg9[%c0_21, %c0_22] : memref<64x1xf32, #tpu.memory_space<vmem>>, vector<64x1xf32>
    %28 = vector.broadcast %27 : vector<64x1xf32> to vector<64x256xf32>
    %29 = arith.addf %26, %28 : vector<64x256xf32>
    %cst_23 = arith.constant 0.000000e+00 : f32
    %30 = vector.broadcast %cst_23 : f32 to vector<64x256xf32>
    %31 = arith.maximumf %29, %30 : vector<64x256xf32>
    %c0_24 = arith.constant 0 : index
    %c0_25 = arith.constant 0 : index
    %32 = vector.load %arg10[%c0_24, %c0_25] : memref<64x256xf32, #tpu.memory_space<vmem>>, vector<64x256xf32>
    tpu.vector_store %arg10[%c0_24, %c0_25], %31 {strides = array<i32>} : memref<64x256xf32, #tpu.memory_space<vmem>>, vector<64x256xf32>,
    return
  }
  func.func @transform_0(%arg0: i32) -> (i32, i32) {
    %c0_i32 = arith.constant 0 : i32
    %c0_i32_0 = arith.constant 0 : i32
    return %c0_i32, %arg0 : i32, i32
  }
  func.func @transform_1(%arg0: i32) -> (i32, i32) {
    %c0_i32 = arith.constant 0 : i32
    %c0_i32_0 = arith.constant 0 : i32
    %c0_i32_1 = arith.constant 0 : i32
    return %c0_i32, %c0_i32_0 : i32, i32
  }
  func.func @transform_2(%arg0: i32) -> (i32, i32) {
    %c0_i32 = arith.constant 0 : i32
    %c0_i32_0 = arith.constant 0 : i32
    %c0_i32_1 = arith.constant 0 : i32
    return %c0_i32, %c0_i32_0 : i32, i32
  }
  func.func @transform_3(%arg0: i32) -> (i32, i32) {
    %c0_i32 = arith.constant 0 : i32
    %c0_i32_0 = arith.constant 0 : i32
    %c0_i32_1 = arith.constant 0 : i32
    return %c0_i32, %c0_i32_0 : i32, i32
  }
  func.func @transform_4(%arg0: i32) -> (i32, i32) {
    %c0_i32 = arith.constant 0 : i32
    %c0_i32_0 = arith.constant 0 : i32
    %c0_i32_1 = arith.constant 0 : i32
    return %c0_i32, %c0_i32_0 : i32, i32
  }
  func.func @transform_5(%arg0: i32) -> (i32, i32) {
    %c0_i32 = arith.constant 0 : i32
    %c0_i32_0 = arith.constant 0 : i32
    %c0_i32_1 = arith.constant 0 : i32
    return %c0_i32, %c0_i32_0 : i32, i32
  }
  func.func @transform_6(%arg0: i32) -> (i32, i32) {
    %c0_i32 = arith.constant 0 : i32
    %c0_i32_0 = arith.constant 0 : i32
    %c0_i32_1 = arith.constant 0 : i32
    return %c0_i32, %c0_i32_0 : i32, i32
  }
  func.func @transform_7(%arg0: i32) -> (i32, i32) {
    %c0_i32 = arith.constant 0 : i32
    %c0_i32_0 = arith.constant 0 : i32
    %c0_i32_1 = arith.constant 0 : i32
    return %c0_i32, %c0_i32_0 : i32, i32
  }
  func.func @transform_8(%arg0: i32) -> (i32, i32) {
    %c0_i32 = arith.constant 0 : i32
    %c0_i32_0 = arith.constant 0 : i32
    %c0_i32_1 = arith.constant 0 : i32
    return %c0_i32, %c0_i32_0 : i32, i32
  }
  func.func @transform_9(%arg0: i32) -> (i32, i32) {
    %c0_i32 = arith.constant 0 : i32
    %c0_i32_0 = arith.constant 0 : i32
    return %c0_i32, %arg0 : i32, i32
  }
}

</mosaic_0001>

<bundles_post_ra>
// kernel: forward_pallas.1
= control target key start
LH: loop header
LB: loop body
LE: loop exit
PB: predicated region body
PF: predicated region fallthrough
CT: control target
= control target key end

     0   :  { %s2255_s30 = smov 0   ;;  %s2257_s10 = smov 0   ;;  %s3065_s0 = inlined_call_operand.vmem [shape: bf16[36,512], index: 0, kind: input, shape index: {}]   ;;  %s3066_s1 = inlined_call_operand.vmem [shape: bf16[128,36], index: 1, kind: input, shape index: {}]   ;;  %s3067_s2 = inlined_call_operand.vmem [shape: f32[128,1], index: 2, kind: input, shape index: {}]   ;;  %s3068_s3 = inlined_call_operand.vmem [shape: bf16[256,128], index: 3, kind: input, shape index: {}]   ;;  %s3069_s4 = inlined_call_operand.vmem [shape: f32[256,1], index: 4, kind: input, shape index: {}]   ;;  %s3070_s5 = inlined_call_operand.vmem [shape: bf16[128,256], index: 5, kind: input, shape index: {}]   ;;  %s3071_s6 = inlined_call_operand.vmem [shape: f32[128,1], index: 6, kind: input, shape index: {}]   ;;  %s3072_s7 = inlined_call_operand.vmem [shape: bf16[64,128], index: 7, kind: input, shape index: {}]   ;;  %s3073_s8 = inlined_call_operand.vmem [shape: f32[64,1], index: 8, kind: input, shape index: {}]   ;;  %s3074_s9 = inlined_call_operand.vmem [shape: f32[64,512], index: 9, kind: output, shape index: {}]  }
   0x1   :  { %s2259_s11 = smov 0  }
   0x2 LB: > { %s2017_s12 = sadd.s32 4294967295, %s2202_s11   ;;  %s2272_s13 = sadd.s32 1, %s2202_s11   ;;  %s2202_s11 = sphi %s2259_s11, %s3099_s11   ;;  %s2198_s10 = sphi %s2257_s10, %s3098_s10   ;;  %s2194_s30 = sphi %s2255_s30, %s3097_s30  }
   0x3   : > { %s23_s14 = ssub.s32 %s2202_s11, %s2272_s13  ;;  %s26_s15 = sadd.s32 1, %s2198_s10 }
   0x4   : > { %p24_p0 = scmp.eq.s32.totalorder %s23_s14, 0  ;;  %p33_p1 = scmp.ne.s32.totalorder %s2198_s10, %s2194_s30 }
   0x5   : > { %p34_p2 = scmp.eq.s32.totalorder %s2202_s11, 0  ;;  %p231_p3 = scmp.eq.s32.totalorder %s2017_s12, 1 }
   0x6   : > { %s2283_s16 = scalar_select %p24_p0, %s2198_s10, %s26_s15  }
   0x7   : > { %p35_p4 = por %p34_p2, %p33_p1  ;;  %p2285_p5 = por %p231_p3, %p33_p1 }
   0x8   : > { %p2020_p6 = scmp.ge.s32.totalorder %s2202_s11, 2 }
   0xa   : > { %277 = sbr.rel (%p2020_p6) target bundleno = 22 (0x16), region = 48 }
   0xf   : > { %280 = sbr.rel (!%p35_p4) target bundleno = 22 (0x16), region = 52  ;;  %s282_s18 = sand.u32 (%p35_p4), 1, %s2198_s10  }
  0x10   : > { %s2089_s19 = sshll.u32 (%p35_p4), %s2202_s11, 3  ;;  %s2091_s20 = smul.u32 (%p35_p4), 40, %s282_s18 }
  0x11   : > { %s287_s23 = scalar_lea.vmem (%p35_p4), %s3065_s0, %s2089_s19 }
  0x12   : > { %v324_v0 = vld [vmem:[%s287_s23] sm:$0xff] (%p35_p4)  ;;  %v326_v1 = vld [vmem:[%s287_s23 + $0x10] sm:$0xff] (%p35_p4)  ;;  %s284_s24 = scalar_lea.vmem (%p35_p4), [#allocation2], %s2091_s20 }
  0x13   : > { %v328_v2 = vld [vmem:[%s287_s23 + $0x20] sm:$0xff] (%p35_p4)  ;;  %v330_v3 = vld [vmem:[%s287_s23 + $0x30] sm:$0xff] (%p35_p4)  ;;  %325 = vst [vmem:[%s284_s24] sm:$0xff] (%p35_p4), %v324_v0  ;;  %327 = vst [vmem:[%s284_s24 + $0x8] sm:$0xff] (%p35_p4), %v326_v1 }
  0x14   : > { %v332_v4 = vld [vmem:[%s287_s23 + $0x40] sm:$0xff]  ;;  %329 = vst [vmem:[%s284_s24 + $0x10] sm:$0xff] %v328_v2  ;;  %331 = vst [vmem:[%s284_s24 + $0x18] sm:$0xff] %v330_v3 }
  0x15   : > { %333 = vst [vmem:[%s284_s24 + $0x20] sm:$0xff] %v332_v4 }
  0x16 PF: > { %p2023_p7 = scmp.ge.s32.totalorder %s2202_s11, 1  ;;  %p338_p8 = scmp.lt.s32.totalorder %s2202_s11, 3 }
  0x18   : > { %p339_p9 = pnand %p2023_p7, %p338_p8 }
  0x1a   : > { %342 = sbr.rel (%p339_p9) target bundleno = 1229 (0x4cd), region = 90 }
  0x1f   : > { %v417_v5 = vld [vmem:[%s3067_s2 + $0x70] sm:$0xff]  ;;  %s345_s27 = sand.u32 1, %s2194_s30   ;;  %v415_v6 = vld [vmem:[%s3067_s2 + $0x60] sm:$0xff]  ;;  %v3075_v7 = vmov 0   ;;  %v418_v8 = vld [vmem:[%s3067_s2 + $0x78] sm:$0xff]  ;;  %vm589_vm0 = vcmask 1041408  }
  0x20   : > { %2118 = vset.pattern.permute.xlu0 %v3075_v7  ;;  %s2092_s14 = smul.u32 40, %s345_s27  ;;  %2119 = vset.pattern.permute.xlu1 %v3075_v7  ;;  %v416_v9 = vld [vmem:[%s3067_s2 + $0x68] sm:$0xff]  ;;  %v413_v15 = vld [vmem:[%s3067_s2 + $0x50] sm:$0xff]  ;;  %v414_v16 = vld [vmem:[%s3067_s2 + $0x58] sm:$0xff]  ;;  %vm564_vm1 = vcmask 293888   ;;  %s2024_s25 = sshll.u32 %s345_s27, 7 }
  0x21   : > { %491 = vperm.xlu0 %2118, %v417_v5   ;;  %481 = vperm.xlu1 %2119, %v415_v6   ;;  %v411_v19 = vld [vmem:[%s3067_s2 + $0x40] sm:$0xff]  ;;  %v412_v20 = vld [vmem:[%s3067_s2 + $0x48] sm:$0xff]  ;;  %v409_v23 = vld [vmem:[%s3067_s2 + $0x30] sm:$0xff]  ;;  %s3014_s26 = scalar_lea.vmem [#allocation3], %s2024_s25  ;;  %s2090_s30 = sshll.u32 (%p2285_p5), %s2017_s12, 4 }
  0x22   : > { %628 = vmatprep.mubr.bf16.mxu0 %v3075_v7  ;;  %1109 = vmatprep.mubr.bf16.mxu1 %v3075_v7  ;;  %s347_s21 = scalar_lea.vmem [#allocation2], %s2092_s14  ;;  %v2128_v22 = vld [vmem:[%s3066_s1] sm:$0xff]   ;;  %v410_v24 = vld [vmem:[%s3067_s2 + $0x38] sm:$0xff]  ;;  %v408_v26 = vld [vmem:[%s3067_s2 + $0x28] sm:$0xff]  ;;  %s1913_s17 = scalar_lea.vmem (%p2285_p5), %s3074_s9, %s2090_s30 }
  0x23   : > { %v402_v10 = vld [vmem:[%s347_s21 + $0x20] sm:$0x33]  ;;  %v2122_v13 = vld [vmem:[%s347_s21 + $0x14] ss:$8 sps:$4 sm:$0xff]   ;;  %v2124_v17 = vld [vmem:[%s347_s21 + $0x10] ss:$8 sps:$4 sm:$0xff]  }
  0x24   : > { %v2038_v11 = vcombine.high %v402_v10, %v402_v10  ;;  %v2037_v12 = vcombine.low %v402_v10, %v402_v10  ;;  %v2125_v18 = vld [vmem:[%s347_s21 + $0x4] ss:$8 sps:$4 sm:$0xff]   ;;  %v2127_v21 = vld [vmem:[%s347_s21] ss:$8 sps:$4 sm:$0xff]   ;;  %v406_v29 = vld [vmem:[%s3067_s2 + $0x18] sm:$0xff] }
  0x25   : > { %496 = vperm.xlu0 %2118, %v418_v8   ;;  %486 = vperm.xlu1 %2119, %v416_v9   ;;  %v407_v25 = vld [vmem:[%s3067_s2 + $0x20] sm:$0xff]  ;;  %v2129_v27 = vld [vmem:[%s3066_s1 + $0x8] sm:$0xff]   ;;  %v405_v28 = vld [vmem:[%s3067_s2 + $0x10] sm:$0xff] }
  0x26   : > { %2039 = vmatprep.subr.msk.bf16.mxu0 %vm589_vm0, %v2038_v11  ;;  %v591_v14 = vsel %vm589_vm0, %v2037_v12, 0  ;;  %v403_v30 = vld [vmem:[%s3067_s2] sm:$0xff]  ;;  %v404_v31 = vld [vmem:[%s3067_s2 + $0x8] sm:$0xff]  ;;  %v2130_v32 = vld [vmem:[%s3066_s1 + $0x10] sm:$0xff]  }
  0x27   : > { %607 = vmatpush1.bf16.msra.mxu0 %v591_v14  ;;  %v803_v33 = vld [vmem:[%s3069_s4 + $0x70] sm:$0xff]  ;;  %v804_v34 = vld [vmem:[%s3069_s4 + $0x78] sm:$0xff]  ;;  %v801_v35 = vld [vmem:[%s3069_s4 + $0x60] sm:$0xff] }
  0x28   : > { %608 = vmatprep.subr.bf16.mxu0 %v2122_v13  ;;  %v802_v36 = vld [vmem:[%s3069_s4 + $0x68] sm:$0xff]  ;;  %v2131_v37 = vld [vmem:[%s3066_s1 + $0x18] sm:$0xff]   ;;  %v799_v38 = vld [vmem:[%s3069_s4 + $0x50] sm:$0xff] }
  0x29   : > { %471 = vperm.xlu0 %2118, %v413_v15   ;;  %476 = vperm.xlu1 %2119, %v414_v16   ;;  %v800_v39 = vld [vmem:[%s3069_s4 + $0x58] sm:$0xff]  ;;  %v797_v40 = vld [vmem:[%s3069_s4 + $0x40] sm:$0xff]  ;;  %v798_v41 = vld [vmem:[%s3069_s4 + $0x48] sm:$0xff] }
  0x2a   : > { %v2132_v42 = vld [vmem:[%s3066_s1 + $0x20] sm:$0xff]   ;;  %v795_v43 = vld [vmem:[%s3069_s4 + $0x30] sm:$0xff]  ;;  %v796_v44 = vld [vmem:[%s3069_s4 + $0x38] sm:$0xff] }
  0x2b   : > { %609 = vmatpush1.bf16.msra.mxu0 %v2124_v17  ;;  %v793_v45 = vld [vmem:[%s3069_s4 + $0x20] sm:$0xff]  ;;  %v794_v46 = vld [vmem:[%s3069_s4 + $0x28] sm:$0xff]  ;;  %v791_v48 = vld [vmem:[%s3069_s4 + $0x10] sm:$0xff] }
  0x2c   : > { %610 = vmatprep.subr.bf16.mxu0 %v2125_v18  ;;  %v2133_v47 = vld [vmem:[%s3066_s1 + $0x28] sm:$0xff]   ;;  %v792_v49 = vld [vmem:[%s3069_s4 + $0x18] sm:$0xff]  ;;  %v789_v50 = vld [vmem:[%s3069_s4] sm:$0xff] }
  0x2d   : > { %461 = vperm.xlu0 %2118, %v411_v19   ;;  %466 = vperm.xlu1 %2119, %v412_v20   ;;  %v790_v51 = vld [vmem:[%s3069_s4 + $0x8] sm:$0xff]  ;;  %v2134_v52 = vld [vmem:[%s3066_s1 + $0x30] sm:$0xff]   ;;  %v820_v54 = vld [vmem:[%s3069_s4 + $0xf8] sm:$0xff] }
  0x2e   : > { %v819_v53 = vld [vmem:[%s3069_s4 + $0xf0] sm:$0xff]  ;;  %v817_v55 = vld [vmem:[%s3069_s4 + $0xe0] sm:$0xff]  ;;  %v818_v56 = vld [vmem:[%s3069_s4 + $0xe8] sm:$0xff] }
  0x2f   : > { %611 = vmatpush1.bf16.msra.mxu0 %v2127_v21  ;;  %v2135_v57 = vld [vmem:[%s3066_s1 + $0x38] sm:$0xff]   ;;  %v815_v58 = vld [vmem:[%s3069_s4 + $0xd0] sm:$0xff]  ;;  %v813_v60 = vld [vmem:[%s3069_s4 + $0xc0] sm:$0xff] }
  0x30   : > { %v816_v59 = vld [vmem:[%s3069_s4 + $0xd8] sm:$0xff]  ;;  %v814_v61 = vld [vmem:[%s3069_s4 + $0xc8] sm:$0xff]  ;;  %v811_v62 = vld [vmem:[%s3069_s4 + $0xb0] sm:$0xff] }
  0x31   : > { %451 = vperm.xlu0 %2118, %v409_v23   ;;  %456 = vperm.xlu1 %2119, %v410_v24   ;;  %v812_v63 = vld [vmem:[%s3069_s4 + $0xb8] sm:$0xff]  ;;  %v809_v0 = vld [vmem:[%s3069_s4 + $0xa0] sm:$0xff]  ;;  %v810_v1 = vld [vmem:[%s3069_s4 + $0xa8] sm:$0xff] }
  0x32   : > { %2040 = vmatmul.mubr.msk.bf16.vlgmr.msra.gmra.mxu0 %vm564_vm1, %v2128_v22  ;;  %v807_v2 = vld [vmem:[%s3069_s4 + $0x90] sm:$0xff]  ;;  %v808_v3 = vld [vmem:[%s3069_s4 + $0x98] sm:$0xff]  ;;  %v805_v4 = vld [vmem:[%s3069_s4 + $0x80] sm:$0xff] }
  0x33   : > { %638 = vmatprep.mubr.bf16.mxu0 %v3075_v7  ;;  %v806_v5 = vld [vmem:[%s3069_s4 + $0x88] sm:$0xff]  ;;  %v1396_v6 = vld [vmem:[%s3071_s6 + $0x70] sm:$0xff]  ;;  %v1397_v8 = vld [vmem:[%s3071_s6 + $0x78] sm:$0xff] }
  0x34   : > { %v1394_v9 = vld [vmem:[%s3071_s6 + $0x60] sm:$0xff]  ;;  %v1395_v10 = vld [vmem:[%s3071_s6 + $0x68] sm:$0xff]  ;;  %v1392_v11 = vld [vmem:[%s3071_s6 + $0x50] sm:$0xff] }
  0x35   : > { %441 = vperm.xlu0 %2118, %v407_v25   ;;  %446 = vperm.xlu1 %2119, %v408_v26   ;;  %v1393_v12 = vld [vmem:[%s3071_s6 + $0x58] sm:$0xff]  ;;  %v1390_v13 = vld [vmem:[%s3071_s6 + $0x40] sm:$0xff]  ;;  %v1391_v14 = vld [vmem:[%s3071_s6 + $0x48] sm:$0xff] }
  0x36   : > { %v1388_v15 = vld [vmem:[%s3071_s6 + $0x30] sm:$0xff]  ;;  %v1389_v16 = vld [vmem:[%s3071_s6 + $0x38] sm:$0xff]  ;;  %v1386_v17 = vld [vmem:[%s3071_s6 + $0x20] sm:$0xff] }
  0x37   : > { %v1387_v18 = vld [vmem:[%s3071_s6 + $0x28] sm:$0xff]  ;;  %v1384_v19 = vld [vmem:[%s3071_s6 + $0x10] sm:$0xff]  ;;  %v1385_v20 = vld [vmem:[%s3071_s6 + $0x18] sm:$0xff] }
  0x38   : > { %v1382_v21 = vld [vmem:[%s3071_s6] sm:$0xff]  ;;  %v1383_v22 = vld [vmem:[%s3071_s6 + $0x8] sm:$0xff]  ;;  %v1729_v25 = vld [vmem:[%s3073_s8 + $0x10] sm:$0xff] }
  0x39   : > { %431 = vperm.xlu0 %2118, %v405_v28   ;;  %436 = vperm.xlu1 %2119, %v406_v29   ;;  %v1727_v23 = vld [vmem:[%s3073_s8] sm:$0xff]  ;;  %v1728_v24 = vld [vmem:[%s3073_s8 + $0x8] sm:$0xff]  ;;  %v1730_v26 = vld [vmem:[%s3073_s8 + $0x18] sm:$0xff] }
  0x3a   : > { %2041 = vmatmul.mubr.msk.bf16.gmra.mxu0 %vm564_vm1, %v2129_v27  ;;  %v1731_v27 = vld [vmem:[%s3073_s8 + $0x20] sm:$0xff]  ;;  %v1732_v28 = vld [vmem:[%s3073_s8 + $0x28] sm:$0xff]  ;;  %v1733_v29 = vld [vmem:[%s3073_s8 + $0x30] sm:$0xff] }
  0x3b   : > { %648 = vmatprep.mubr.bf16.mxu0 %v3075_v7 }
  0x3d   : > { %421 = vperm.xlu0 %2118, %v403_v30   ;;  %426 = vperm.xlu1 %2119, %v404_v31   ;;  %v1734_v30 = vld [vmem:[%s3073_s8 + $0x38] sm:$0xff] }
  0x41   : > { %893 = vperm.xlu0 %2118, %v803_v33   ;;  %898 = vperm.xlu1 %2119, %v804_v34  }
  0x42   : > { %2042 = vmatmul.mubr.msk.bf16.gmra.mxu0 %vm564_vm1, %v2130_v32 }
  0x43   : > { %658 = vmatprep.mubr.bf16.mxu0 %v3075_v7 }
  0x45   : > { %883 = vperm.xlu0 %2118, %v801_v35   ;;  %888 = vperm.xlu1 %2119, %v802_v36  }
  0x49   : > { %873 = vperm.xlu0 %2118, %v799_v38   ;;  %878 = vperm.xlu1 %2119, %v800_v39  }
  0x4a   : > { %2043 = vmatmul.mubr.msk.bf16.gmra.mxu0 %vm564_vm1, %v2131_v37 }
  0x4b   : > { %668 = vmatprep.mubr.bf16.mxu0 %v3075_v7 }
  0x4d   : > { %863 = vperm.xlu0 %2118, %v797_v40   ;;  %868 = vperm.xlu1 %2119, %v798_v41  }
  0x51   : > { %853 = vperm.xlu0 %2118, %v795_v43   ;;  %858 = vperm.xlu1 %2119, %v796_v44  }
  0x52   : > { %2044 = vmatmul.mubr.msk.bf16.gmra.mxu0 %vm564_vm1, %v2132_v42 }
  0x53   : > { %678 = vmatprep.mubr.bf16.mxu0 %v3075_v7 }
  0x55   : > { %843 = vperm.xlu0 %2118, %v793_v45   ;;  %848 = vperm.xlu1 %2119, %v794_v46  }
  0x59   : > { %833 = vperm.xlu0 %2118, %v791_v48   ;;  %838 = vperm.xlu1 %2119, %v792_v49  }
  0x5a   : > { %2045 = vmatmul.mubr.msk.bf16.gmra.mxu0 %vm564_vm1, %v2133_v47 }
  0x5b   : > { %688 = vmatprep.mubr.bf16.mxu0 %v3075_v7 }
  0x5d   : > { %823 = vperm.xlu0 %2118, %v789_v50   ;;  %828 = vperm.xlu1 %2119, %v790_v51  }
  0x61   : > { %973 = vperm.xlu0 %2118, %v819_v53   ;;  %978 = vperm.xlu1 %2119, %v820_v54  }
  0x62   : > { %2046 = vmatmul.mubr.msk.bf16.gmra.mxu0 %vm564_vm1, %v2134_v52 }
  0x63   : > { %698 = vmatprep.mubr.bf16.mxu0 %v3075_v7 }
  0x65   : > { %963 = vperm.xlu0 %2118, %v817_v55   ;;  %968 = vperm.xlu1 %2119, %v818_v56  }
  0x69   : > { %953 = vperm.xlu0 %2118, %v815_v58   ;;  %958 = vperm.xlu1 %2119, %v816_v59  }
  0x6a   : > { %2047 = vmatmul.mubr.msk.bf16.gmra.mxu0 %vm564_vm1, %v2135_v57 }
  0x6d   : > { %943 = vperm.xlu0 %2118, %v813_v60   ;;  %948 = vperm.xlu1 %2119, %v814_v61  }
  0x71   : > { %933 = vperm.xlu0 %2118, %v811_v62   ;;  %938 = vperm.xlu1 %2119, %v812_v63  }
  0x75   : > { %923 = vperm.xlu0 %2118, %v809_v0   ;;  %928 = vperm.xlu1 %2119, %v810_v1  }
  0x79   : > { %913 = vperm.xlu0 %2118, %v807_v2   ;;  %918 = vperm.xlu1 %2119, %v808_v3  }
  0x7d   : > { %903 = vperm.xlu0 %2118, %v805_v4   ;;  %908 = vperm.xlu1 %2119, %v806_v5  }
  0x81   : > { %1470 = vperm.xlu0 %2118, %v1396_v6   ;;  %1475 = vperm.xlu1 %2119, %v1397_v8  }
  0x85   : > { %1460 = vperm.xlu0 %2118, %v1394_v9   ;;  %1465 = vperm.xlu1 %2119, %v1395_v10  }
  0x89   : > { %1450 = vperm.xlu0 %2118, %v1392_v11   ;;  %1455 = vperm.xlu1 %2119, %v1393_v12  }
  0x8d   : > { %1440 = vperm.xlu0 %2118, %v1390_v13   ;;  %1445 = vperm.xlu1 %2119, %v1391_v14  }
  0x91   : > { %1430 = vperm.xlu0 %2118, %v1388_v15   ;;  %1435 = vperm.xlu1 %2119, %v1389_v16  }
  0x95   : > { %1420 = vperm.xlu0 %2118, %v1386_v17   ;;  %1425 = vperm.xlu1 %2119, %v1387_v18  }
  0x99   : > { %1410 = vperm.xlu0 %2118, %v1384_v19   ;;  %1415 = vperm.xlu1 %2119, %v1385_v20  }
  0x9c   : > { %v2559_v31 = vpop.permute.xlu0 %491  ;;  %v2561_v32 = vpop.permute.xlu1 %481 }
  0x9d   : > { %1400 = vperm.xlu0 %2118, %v1382_v21   ;;  %1405 = vperm.xlu1 %2119, %v1383_v22  }
  0xa0   : > { %v2563_v33 = vpop.permute.xlu0 %496  ;;  %v2565_v34 = vpop.permute.xlu1 %486 }
  0xa1   : > { %1737 = vperm.xlu0 %2118, %v1727_v23   ;;  %1742 = vperm.xlu1 %2119, %v1728_v24  }
  0xa4   : > { %v2567_v35 = vpop.permute.xlu0 %471  ;;  %v2569_v36 = vpop.permute.xlu1 %476 }
  0xa5   : > { %1747 = vperm.xlu0 %2118, %v1729_v25   ;;  %1752 = vperm.xlu1 %2119, %v1730_v26  }
  0xa8   : > { %v2571_v37 = vpop.permute.xlu0 %461  ;;  %v2573_v38 = vpop.permute.xlu1 %466 }
  0xa9   : > { %1757 = vperm.xlu0 %2118, %v1731_v27   ;;  %1762 = vperm.xlu1 %2119, %v1732_v28  }
  0xac   : > { %v2575_v39 = vpop.permute.xlu0 %451  ;;  %v2577_v40 = vpop.permute.xlu1 %456 }
  0xad   : > { %1767 = vperm.xlu0 %2118, %v1733_v29   ;;  %1772 = vperm.xlu1 %2119, %v1734_v30  }
  0xb0   : > { %v2579_v41 = vpop.permute.xlu0 %441  ;;  %v2581_v42 = vpop.permute.xlu1 %446 }
  0xb4   : > { %v432_v43 = vpop.permute.xlu0 %431  ;;  %v437_v44 = vpop.permute.xlu1 %436 }
  0xb8   : > { %v422_v46 = vpop.permute.xlu0 %421  ;;  %v427_v49 = vpop.permute.xlu1 %426 }
  0xf2   : > { %v630_v45 = vpop.f32.mrf.mxu0 }
  0xf3   : > { %v631_v48 = vadd.f32 %v630_v45, %v422_v46 }
  0xf4   : > { %v632_v47 = vpop.f32.mrf.mxu0 }
  0xf5   : > { %v633_v51 = vadd.f32 %v632_v47, %v422_v46  ;;  %v709_v54 = vmax.f32 %v631_v48, 0.0 }
  0xf6   : > { %v634_v50 = vpop.f32.mrf.mxu0 }
  0xf7   : > { %v635_v52 = vadd.f32 %v634_v50, %v427_v49  ;;  %v710_v58 = vmax.f32 %v633_v51, 0.0 }
  0xf8   : > { %v636_v53 = vpop.f32.mrf.mxu0 }
  0xf9   : > { %v711_v55 = vmax.f32 %v635_v52, 0.0  ;;  %v637_v56 = vadd.f32 %v636_v53, %v427_v49 }
  0xfa   : > { %v640_v57 = vpop.f32.mrf.mxu0 }
  0xfb   : > { %v2583_v59 = vpack.c.bf16 %v711_v55, %v709_v54  ;;  %v712_v60 = vmax.f32 %v637_v56, 0.0  ;;  %v641_v63 = vadd.f32 %v640_v57, %v432_v43 }
  0xfc   : > { %v642_v61 = vpop.f32.mrf.mxu0 }
  0xfd   : > { %v2585_v62 = vpack.c.bf16 %v712_v60, %v710_v58  ;;  %v643_v1 = vadd.f32 %v642_v61, %v432_v43  ;;  %v713_v4 = vmax.f32 %v641_v63, 0.0 }
  0xfe   : > { %v644_v0 = vpop.f32.mrf.mxu0 }
  0xff   : > { %v645_v2 = vadd.f32 %v644_v0, %v437_v44  ;;  %v714_v9 = vmax.f32 %v643_v1, 0.0 }
 0x100   : > { %v646_v3 = vpop.f32.mrf.mxu0 }
 0x101   : > { %v715_v5 = vmax.f32 %v645_v2, 0.0  ;;  %v647_v6 = vadd.f32 %v646_v3, %v437_v44 }
 0x102   : > { %v2587_v8 = vpop.f32.mrf.mxu0 }
 0x103   : > { %v2589_v10 = vpack.c.bf16 %v715_v5, %v713_v4  ;;  %v716_v11 = vmax.f32 %v647_v6, 0.0 }
 0x104   : > { %v2591_v12 = vpop.f32.mrf.mxu0 }
 0x105   : > { %v2593_v13 = vpack.c.bf16 %v716_v11, %v714_v9 }
 0x106   : > { %v2595_v14 = vpop.f32.mrf.mxu0 }
 0x108   : > { %v2597_v15 = vpop.f32.mrf.mxu0 }
 0x10a   : > { %v2599_v16 = vpop.f32.mrf.mxu0 }
 0x10c   : > { %v662_v17 = vpop.f32.mrf.mxu0 }
 0x10e   : > { %v664_v18 = vpop.f32.mrf.mxu0 }
 0x110   : > { %v666_v19 = vpop.f32.mrf.mxu0 }
 0x112   : > { %v670_v20 = vpop.f32.mrf.mxu0 }
 0x114   : > { %v672_v21 = vpop.f32.mrf.mxu0 }
 0x116   : > { %v674_v22 = vpop.f32.mrf.mxu0 }
 0x118   : > { %v676_v23 = vpop.f32.mrf.mxu0 }
 0x11a   : > { %v680_v24 = vpop.f32.mrf.mxu0 }
 0x11b   : > { %v681_v6 = vadd.f32 %v680_v24, %v2567_v35 }
 0x11c   : > { %v682_v25 = vpop.f32.mrf.mxu0 }
 0x11d   : > { %v683_v0 = vadd.f32 %v682_v25, %v2567_v35  ;;  %v675_v25 = vadd.f32 %v674_v22, %v2573_v38  ;;  %v663_v35 = vadd.f32 %v662_v17, %v2575_v39 }
 0x11e   : > { %v684_v26 = vpop.f32.mrf.mxu0 }
 0x11f   : > { %v685_v2 = vadd.f32 %v684_v26, %v2569_v36  ;;  %v730_v11 = vmax.f32 %v683_v0, 0.0  ;;  %v722_v17 = vmax.f32 %v663_v35, 0.0  ;;  %v2699_v0 = vpop.permute.xlu1 %898 }
 0x120   : > { %v686_v27 = vpop.f32.mrf.mxu0 }
 0x121   : > { %v687_v56 = vadd.f32 %v686_v27, %v2569_v36  ;;  %v731_v27 = vmax.f32 %v685_v2, 0.0  ;;  %v667_v36 = vadd.f32 %v666_v19, %v2577_v40  ;;  %v661_v19 = vadd.f32 %v2599_v16, %v2575_v39 }
 0x122   : > { %v690_v28 = vpop.f32.mrf.mxu0 }
 0x123   : > { %v691_v61 = vadd.f32 %v690_v28, %v2561_v32  ;;  %v724_v22 = vmax.f32 %v667_v36, 0.0 }
 0x124   : > { %v692_v29 = vpop.f32.mrf.mxu0 }
 0x125   : > { %v693_v52 = vadd.f32 %v692_v29, %v2561_v32  ;;  %v733_v9 = vmax.f32 %v691_v61, 0.0  ;;  %v673_v32 = vadd.f32 %v672_v21, %v2571_v37  ;;  %v665_v21 = vadd.f32 %v664_v18, %v2577_v40  ;;  %v2151_v61 = vld [vmem:[%s3068_s3 + $0x78] sm:$0xff]  }
 0x126   : > { %v694_v30 = vpop.f32.mrf.mxu0  ;;  %v655_v40 = vadd.f32 %v2595_v14, %v2581_v42  ;;  %v2143_v14 = vld [vmem:[%s3068_s3 + $0x38] sm:$0xff]  }
 0x127   : > { %v695_v54 = vadd.f32 %v694_v30, %v2565_v34  ;;  %v734_v1 = vmax.f32 %v693_v52, 0.0  ;;  %v729_v30 = vmax.f32 %v681_v6, 0.0  ;;  %v726_v24 = vmax.f32 %v673_v32, 0.0 }
 0x128   : > { %v696_v43 = vpop.f32.mrf.mxu0  ;;  %v723_v18 = vmax.f32 %v665_v21, 0.0  ;;  %v719_v16 = vmax.f32 %v655_v40, 0.0 }
 0x129   : > { %v697_v47 = vadd.f32 %v696_v43, %v2565_v34  ;;  %v735_v3 = vmax.f32 %v695_v54, 0.0  ;;  %v732_v34 = vmax.f32 %v687_v56, 0.0  ;;  %v727_v43 = vmax.f32 %v675_v25, 0.0  ;;  %v2145_v54 = vld [vmem:[%s3068_s3 + $0x48] sm:$0xff]   ;;  %v2147_v56 = vld [vmem:[%s3068_s3 + $0x58] sm:$0xff]  }
 0x12a   : > { %v700_v44 = vpop.f32.mrf.mxu0 }
 0x12b   : > { %v701_v50 = vadd.f32 %v700_v44, %v2559_v31  ;;  %v736_v57 = vmax.f32 %v697_v47, 0.0  ;;  %v785_v28 = vpack.c.bf16 %v735_v3, %v733_v9  ;;  %v784_v29 = vpack.c.bf16 %v732_v34, %v730_v11 }
 0x12c   : > { %v702_v45 = vpop.f32.mrf.mxu0  ;;  %v783_v44 = vpack.c.bf16 %v731_v27, %v729_v30 }
 0x12d   : > { %v703_v48 = vadd.f32 %v702_v45, %v2559_v31  ;;  %v737_v63 = vmax.f32 %v701_v50, 0.0  ;;  %v786_v5 = vpack.c.bf16 %v736_v57, %v734_v1  ;;  %v2148_v57 = vld [vmem:[%s3068_s3 + $0x60] sm:$0xff]  }
 0x12e   : > { %v704_v46 = vpop.f32.mrf.mxu0 }
 0x12f   : > { %v705_v49 = vadd.f32 %v704_v46, %v2563_v33  ;;  %v738_v58 = vmax.f32 %v703_v48, 0.0  ;;  %v780_v48 = vpack.c.bf16 %v724_v22, %v722_v17 }
 0x130   : > { %v706_v51 = vpop.f32.mrf.mxu0 }
 0x131   : > { %v707_v53 = vadd.f32 %v706_v51, %v2563_v33  ;;  %v739_v55 = vmax.f32 %v705_v49, 0.0  ;;  %v677_v33 = vadd.f32 %v676_v23, %v2573_v38  ;;  %v671_v23 = vadd.f32 %v670_v20, %v2571_v37 }
 0x132   : > { %v657_v38 = vadd.f32 %v2597_v15, %v2581_v42  ;;  %v653_v37 = vadd.f32 %v2591_v12, %v2579_v41  ;;  %v651_v15 = vadd.f32 %v2587_v8, %v2579_v41  ;;  %v721_v49 = vmax.f32 %v661_v19, 0.0  ;;  %v2136_v41 = vld [vmem:[%s3068_s3] sm:$0xff]   ;;  %v2137_v42 = vld [vmem:[%s3068_s3 + $0x8] sm:$0xff]  }
 0x133   : > { %v740_v60 = vmax.f32 %v707_v53, 0.0  ;;  %v787_v4 = vpack.c.bf16 %v739_v55, %v737_v63  ;;  %v728_v26 = vmax.f32 %v677_v33, 0.0  ;;  %v725_v46 = vmax.f32 %v671_v23, 0.0  ;;  %v2140_v8 = vld [vmem:[%s3068_s3 + $0x20] sm:$0xff]   ;;  %v2146_v55 = vld [vmem:[%s3068_s3 + $0x50] sm:$0xff]   ;;  %v2697_v63 = vpop.permute.xlu0 %893 }
 0x134   : > { %v720_v47 = vmax.f32 %v657_v38, 0.0  ;;  %v718_v39 = vmax.f32 %v653_v37, 0.0  ;;  %v779_v50 = vpack.c.bf16 %v723_v18, %v721_v49  ;;  %v717_v12 = vmax.f32 %v651_v15, 0.0  ;;  %v2144_v53 = vld [vmem:[%s3068_s3 + $0x40] sm:$0xff]  }
 0x135   : > { %v788_v31 = vpack.c.bf16 %v740_v60, %v738_v58  ;;  %v782_v45 = vpack.c.bf16 %v728_v26, %v726_v24  ;;  %v781_v20 = vpack.c.bf16 %v727_v43, %v725_v46  ;;  %v2149_v58 = vld [vmem:[%s3068_s3 + $0x68] sm:$0xff]   ;;  %v2150_v60 = vld [vmem:[%s3068_s3 + $0x70] sm:$0xff]  }
 0x136   : > { %v778_v51 = vpack.c.bf16 %v720_v47, %v718_v39  ;;  %v777_v52 = vpack.c.bf16 %v719_v16, %v717_v12 }
 0x137   : > { %1077 = vmatprep.subr.bf16.mxu1 %v788_v31  ;;  %v2701_v1 = vpop.permute.xlu0 %883  ;;  %v2703_v31 = vpop.permute.xlu1 %888 }
 0x138   : > { %1078 = vmatpush1.bf16.msra.mxu1 %v787_v4 }
 0x139   : > { %1079 = vmatprep.subr.bf16.mxu1 %v786_v5 }
 0x13b   : > { %v2705_v2 = vpop.permute.xlu0 %873  ;;  %v2707_v3 = vpop.permute.xlu1 %878 }
 0x13c   : > { %1080 = vmatpush1.bf16.msra.mxu1 %v785_v28 }
 0x13d   : > { %1081 = vmatprep.subr.bf16.mxu1 %v784_v29 }
 0x13f   : > { %v2709_v4 = vpop.permute.xlu0 %863  ;;  %v2711_v33 = vpop.permute.xlu1 %868 }
 0x140   : > { %1082 = vmatpush1.bf16.msra.mxu1 %v783_v44 }
 0x141   : > { %1083 = vmatprep.subr.bf16.mxu1 %v782_v45 }
 0x143   : > { %v2713_v34 = vpop.permute.xlu0 %853  ;;  %v2715_v5 = vpop.permute.xlu1 %858 }
 0x144   : > { %1084 = vmatpush1.bf16.msra.mxu1 %v781_v20 }
 0x145   : > { %1085 = vmatprep.subr.bf16.mxu1 %v780_v48 }
 0x147   : > { %v2717_v6 = vpop.permute.xlu0 %843  ;;  %v2719_v9 = vpop.permute.xlu1 %848 }
 0x148   : > { %1086 = vmatpush1.bf16.msra.mxu1 %v779_v50 }
 0x149   : > { %1087 = vmatprep.subr.bf16.mxu1 %v778_v51 }
 0x14b   : > { %v834_v32 = vpop.permute.xlu0 %833  ;;  %v839_v11 = vpop.permute.xlu1 %838 }
 0x14c   : > { %1088 = vmatpush1.bf16.msra.mxu1 %v777_v52 }
 0x14d   : > { %1089 = vmatprep.subr.bf16.mxu1 %v2593_v13  ;;  %v2142_v13 = vld [vmem:[%s3068_s3 + $0x30] sm:$0xff]  }
 0x14f   : > { %v824_v27 = vpop.permute.xlu0 %823  ;;  %v829_v26 = vpop.permute.xlu1 %828 }
 0x150   : > { %1090 = vmatpush1.bf16.msra.mxu1 %v2589_v10  ;;  %v2141_v10 = vld [vmem:[%s3068_s3 + $0x28] sm:$0xff]  }
 0x151   : > { %1091 = vmatprep.subr.bf16.mxu1 %v2585_v62  ;;  %v2138_v62 = vld [vmem:[%s3068_s3 + $0x10] sm:$0xff]  }
 0x154   : > { %1092 = vmatpush1.bf16.msra.mxu1 %v2583_v59  ;;  %v2139_v59 = vld [vmem:[%s3068_s3 + $0x18] sm:$0xff]  }
 0x157   : > { %1110 = vmatmul.mubr.bf16.vlgmr.msra.gmra.mxu1 %v2136_v41 }
 0x158   : > { %1119 = vmatprep.mubr.bf16.mxu1 %v3075_v7 }
 0x15f   : > { %1120 = vmatmul.mubr.bf16.gmra.mxu1 %v2137_v42  ;;  %v2737_v42 = vpop.permute.xlu0 %973 }
 0x160   : > { %1129 = vmatprep.mubr.bf16.mxu1 %v3075_v7 }
 0x167   : > { %1130 = vmatmul.mubr.bf16.gmra.mxu1 %v2138_v62 }
 0x168   : > { %1139 = vmatprep.mubr.bf16.mxu1 %v3075_v7 }
 0x16f   : > { %1140 = vmatmul.mubr.bf16.gmra.mxu1 %v2139_v59  ;;  %v2741_v59 = vpop.permute.xlu1 %978 }
 0x170   : > { %1149 = vmatprep.mubr.bf16.mxu1 %v3075_v7 }
 0x177   : > { %1150 = vmatmul.mubr.bf16.gmra.mxu1 %v2140_v8 }
 0x178   : > { %1159 = vmatprep.mubr.bf16.mxu1 %v3075_v7 }
 0x17f   : > { %1160 = vmatmul.mubr.bf16.gmra.mxu1 %v2141_v10 }
 0x180   : > { %1169 = vmatprep.mubr.bf16.mxu1 %v3075_v7 }
 0x187   : > { %1170 = vmatmul.mubr.bf16.gmra.mxu1 %v2142_v13  ;;  %v2747_v13 = vpop.permute.xlu0 %963 }
 0x188   : > { %1179 = vmatprep.mubr.bf16.mxu1 %v3075_v7 }
 0x18f   : > { %1180 = vmatmul.mubr.bf16.gmra.mxu1 %v2143_v14 }
 0x190   : > { %1189 = vmatprep.mubr.bf16.mxu1 %v3075_v7 }
 0x197   : > { %1190 = vmatmul.mubr.bf16.gmra.mxu1 %v2144_v53  ;;  %v2749_v53 = vpop.permute.xlu1 %968 }
 0x198   : > { %1199 = vmatprep.mubr.bf16.mxu1 %v3075_v7 }
 0x19f   : > { %1200 = vmatmul.mubr.bf16.gmra.mxu1 %v2145_v54 }
 0x1a0   : > { %1209 = vmatprep.mubr.bf16.mxu1 %v3075_v7 }
 0x1a7   : > { %1210 = vmatmul.mubr.bf16.gmra.mxu1 %v2146_v55 }
 0x1a8   : > { %1219 = vmatprep.mubr.bf16.mxu1 %v3075_v7 }
 0x1af   : > { %1220 = vmatmul.mubr.bf16.gmra.mxu1 %v2147_v56  ;;  %v2154_v56 = vld [vmem:[%s3070_s5 + $0x4] ss:$8 sps:$4 sm:$0xff]  }
 0x1b0   : > { %1229 = vmatprep.mubr.bf16.mxu1 %v3075_v7  ;;  %1590 = vmatprep.mubr.bf16.mxu0 %v2154_v56 }
 0x1b7   : > { %1230 = vmatmul.mubr.bf16.gmra.mxu1 %v2148_v57  ;;  %v2756_v57 = vpop.permute.xlu0 %953 }
 0x1b8   : > { %1239 = vmatprep.mubr.bf16.mxu1 %v3075_v7 }
 0x1bf   : > { %1240 = vmatmul.mubr.bf16.gmra.mxu1 %v2149_v58 }
 0x1c0   : > { %1249 = vmatprep.mubr.bf16.mxu1 %v3075_v7 }
 0x1c7   : > { %1250 = vmatmul.mubr.bf16.gmra.mxu1 %v2150_v60  ;;  %v2760_v60 = vpop.permute.xlu1 %958 }
 0x1c8   : > { %1259 = vmatprep.mubr.bf16.mxu1 %v3075_v7 }
 0x1cf   : > { %1260 = vmatmul.mubr.bf16.gmra.mxu1 %v2151_v61 }
 0x217   : > { %v1111_v25 = vpop.f32.mrf.mxu1 }
 0x218   : > { %v1112_v36 = vadd.f32 %v1111_v25, %v824_v27 }
 0x219   : > { %v1113_v28 = vpop.f32.mrf.mxu1 }
 0x21a   : > { %v1114_v23 = vadd.f32 %v1113_v28, %v824_v27  ;;  %v1270_v24 = vmax.f32 %v1112_v36, 0.0  ;;  %v2764_v27 = vpop.permute.xlu1 %948 }
 0x21b   : > { %v1115_v29 = vpop.f32.mrf.mxu1  ;;  %3085 = vst [vmem:[#allocation5_spill] sm:$0xff] %v2764_v27 }
 0x21c   : > { %v1116_v30 = vadd.f32 %v1115_v29, %v829_v26  ;;  %v1271_v38 = vmax.f32 %v1114_v23, 0.0 }
 0x21d   : > { %v1117_v35 = vpop.f32.mrf.mxu1 }
 0x21e   : > { %v1272_v21 = vmax.f32 %v1116_v30, 0.0  ;;  %v1118_v43 = vadd.f32 %v1117_v35, %v829_v26  ;;  %v2768_v23 = vpop.permute.xlu1 %938 }
 0x21f   : > { %v1121_v44 = vpop.f32.mrf.mxu1  ;;  %3087 = vst [vmem:[#allocation7_spill] sm:$0xff] %v2768_v23 }
 0x220   : > { %v2721_v22 = vpack.c.bf16 %v1272_v21, %v1270_v24  ;;  %v1273_v45 = vmax.f32 %v1118_v43, 0.0  ;;  %v1122_v37 = vadd.f32 %v1121_v44, %v834_v32 }
 0x221   : > { %v1123_v19 = vpop.f32.mrf.mxu1 }
 0x222   : > { %v2723_v46 = vpack.c.bf16 %v1273_v45, %v1271_v38  ;;  %v1124_v40 = vadd.f32 %v1123_v19, %v834_v32  ;;  %v1274_v47 = vmax.f32 %v1122_v37, 0.0  ;;  %v2772_v43 = vpop.permute.xlu1 %928 }
 0x223   : > { %v1125_v17 = vpop.f32.mrf.mxu1  ;;  %3089 = vst [vmem:[#allocation9_spill] sm:$0xff] %v2772_v43 }
 0x224   : > { %v1126_v18 = vadd.f32 %v1125_v17, %v839_v11  ;;  %v1275_v39 = vmax.f32 %v1124_v40, 0.0 }
 0x225   : > { %v1127_v20 = vpop.f32.mrf.mxu1 }
 0x226   : > { %v1276_v48 = vmax.f32 %v1126_v18, 0.0  ;;  %v1128_v15 = vadd.f32 %v1127_v20, %v839_v11  ;;  %v2762_v11 = vpop.permute.xlu0 %943  ;;  %v2779_v18 = vpop.permute.xlu1 %918 }
 0x227   : > { %v2725_v49 = vpop.f32.mrf.mxu1  ;;  %3084 = vst [vmem:[#allocation4_spill] sm:$0xff] %v2762_v11 }
 0x228   : > { %v2727_v16 = vpack.c.bf16 %v1276_v48, %v1274_v47  ;;  %v1277_v50 = vmax.f32 %v1128_v15, 0.0 }
 0x229   : > { %v2729_v51 = vpop.f32.mrf.mxu1 }
 0x22a   : > { %v2731_v12 = vpack.c.bf16 %v1277_v50, %v1275_v39  ;;  %v2766_v26 = vpop.permute.xlu0 %933 }
 0x22b   : > { %v2733_v52 = vpop.f32.mrf.mxu1  ;;  %3086 = vst [vmem:[#allocation6_spill] sm:$0xff] %v2766_v26 }
 0x22d   : > { %v2735_v41 = vpop.f32.mrf.mxu1 }
 0x22e   : > { %v2770_v24 = vpop.permute.xlu0 %923 }
 0x22f   : > { %v2739_v62 = vpop.f32.mrf.mxu1  ;;  %3088 = vst [vmem:[#allocation8_spill] sm:$0xff] %v2770_v24 }
 0x231   : > { %v2743_v8 = vpop.f32.mrf.mxu1 }
 0x232   : > { %v2774_v45 = vpop.permute.xlu0 %913 }
 0x233   : > { %v2745_v10 = vpop.f32.mrf.mxu1 }
 0x235   : > { %v1147_v14 = vpop.f32.mrf.mxu1 }
 0x236   : > { %v904_v43 = vpop.permute.xlu0 %903 }
 0x237   : > { %v2751_v54 = vpop.f32.mrf.mxu1 }
 0x239   : > { %v1153_v55 = vpop.f32.mrf.mxu1 }
 0x23b   : > { %v2758_v58 = vpop.f32.mrf.mxu1 }
 0x23d   : > { %v1157_v61 = vpop.f32.mrf.mxu1 }
 0x23f   : > { %v1161_v32 = vpop.f32.mrf.mxu1 }
 0x241   : > { %v1163_v25 = vpop.f32.mrf.mxu1 }
 0x243   : > { %v1165_v28 = vpop.f32.mrf.mxu1 }
 0x245   : > { %v1167_v36 = vpop.f32.mrf.mxu1 }
 0x246   : > { %v1168_v7 = vadd.f32 %v1167_v36, %v2707_v3 }
 0x247   : > { %v1171_v29 = vpop.f32.mrf.mxu1 }
 0x249   : > { %v1173_v30 = vpop.f32.mrf.mxu1 }
 0x24a   : > { %v1174_v48 = vadd.f32 %v1173_v30, %v2701_v1 }
 0x24b   : > { %v1175_v35 = vpop.f32.mrf.mxu1 }
 0x24c   : > { %v1176_v39 = vadd.f32 %v1175_v35, %v2703_v31  ;;  %v1166_v35 = vadd.f32 %v1165_v28, %v2707_v3 }
 0x24d   : > { %v1177_v21 = vpop.f32.mrf.mxu1 }
 0x24e   : > { %v1178_v37 = vadd.f32 %v1177_v21, %v2703_v31  ;;  %v1158_v31 = vadd.f32 %v1157_v61, %v2711_v33 }
 0x24f   : > { %v1181_v44 = vpop.f32.mrf.mxu1 }
 0x250   : > { %v1182_v20 = vadd.f32 %v1181_v44, %v2697_v63  ;;  %v1297_v21 = vmax.f32 %v1178_v37, 0.0  ;;  %v1295_v44 = vmax.f32 %v1174_v48, 0.0 }
 0x251   : > { %v1183_v38 = vpop.f32.mrf.mxu1 }
 0x252   : > { %v1184_v17 = vadd.f32 %v1183_v38, %v2697_v63  ;;  %v1298_v26 = vmax.f32 %v1182_v20, 0.0  ;;  %v1164_v63 = vadd.f32 %v1163_v25, %v2705_v2  ;;  %v1154_v25 = vadd.f32 %v1153_v55, %v2709_v4 }
 0x253   : > { %v1185_v19 = vpop.f32.mrf.mxu1 }
 0x254   : > { %v1186_v40 = vadd.f32 %v1185_v19, %v2699_v0  ;;  %v1299_v24 = vmax.f32 %v1184_v17, 0.0  ;;  %v1172_v19 = vadd.f32 %v1171_v29, %v2701_v1  ;;  %v1293_v17 = vmax.f32 %v1168_v7, 0.0 }
 0x255   : > { %v1187_v47 = vpop.f32.mrf.mxu1  ;;  %v1148_v1 = vadd.f32 %v1147_v14, %v2715_v5  ;;  %v1162_v29 = vadd.f32 %v1161_v32, %v2705_v2  ;;  %v1291_v61 = vmax.f32 %v1164_v63, 0.0  ;;  %v1156_v7 = vadd.f32 %v2758_v58, %v2711_v33 }
 0x256   : > { %v1188_v15 = vadd.f32 %v1187_v47, %v2699_v0  ;;  %v1300_v50 = vmax.f32 %v1186_v40, 0.0  ;;  %v909_v0 = vpop.permute.xlu1 %908  ;;  %v1296_v40 = vmax.f32 %v1176_v39, 0.0  ;;  %v1363_v47 = vpack.c.bf16 %v1297_v21, %v1295_v44 }
 0x257   : > { %v1191_v56 = vpop.f32.mrf.mxu1  ;;  %v1361_v14 = vpack.c.bf16 %v1293_v17, %v1291_v61  ;;  %v1152_v32 = vadd.f32 %v2751_v54, %v2709_v4  ;;  %v1287_v21 = vmax.f32 %v1154_v25, 0.0  ;;  %v1288_v63 = vmax.f32 %v1156_v7, 0.0 }
 0x258   : > { %v1301_v38 = vmax.f32 %v1188_v15, 0.0  ;;  %v1192_v11 = vadd.f32 %v1191_v56, %v904_v43  ;;  %v1364_v36 = vpack.c.bf16 %v1300_v50, %v1298_v26  ;;  %v1289_v26 = vmax.f32 %v1158_v31, 0.0 }
 0x259   : > { %v1193_v23 = vpop.f32.mrf.mxu1  ;;  %v1290_v56 = vmax.f32 %v1162_v29, 0.0  ;;  %v1285_v44 = vmax.f32 %v1148_v1, 0.0  ;;  %v1134_v31 = vadd.f32 %v2729_v51, %v2717_v6  ;;  %v1132_v29 = vadd.f32 %v2725_v49, %v2717_v6 }
 0x25a   : > { %v1365_v30 = vpack.c.bf16 %v1301_v38, %v1299_v24  ;;  %v1194_v15 = vadd.f32 %v1193_v23, %v904_v43  ;;  %v1294_v24 = vmax.f32 %v1172_v19, 0.0  ;;  %v1302_v48 = vmax.f32 %v1192_v11, 0.0 }
 0x25b   : > { %v1195_v37 = vpop.f32.mrf.mxu1  ;;  %v1292_v23 = vmax.f32 %v1166_v35, 0.0  ;;  %v1138_v38 = vadd.f32 %v2735_v41, %v2719_v9  ;;  %v1146_v19 = vadd.f32 %v2745_v10, %v2715_v5  ;;  %v1142_v35 = vadd.f32 %v2739_v62, %v2713_v34 }
 0x25c   : > { %v1196_v27 = vadd.f32 %v1195_v37, %v909_v0  ;;  %1558 = vmatprep.subr.bf16.mxu0 %v1365_v30  ;;  %v1362_v43 = vpack.c.bf16 %v1296_v40, %v1294_v24  ;;  %v1303_v50 = vmax.f32 %v1194_v15, 0.0  ;;  %v1359_v30 = vpack.c.bf16 %v1289_v26, %v1287_v21 }
 0x25d   : > { %v1197_v20 = vpop.f32.mrf.mxu1  ;;  %1559 = vmatpush1.bf16.msra.mxu0 %v1364_v36  ;;  %v1360_v4 = vpack.c.bf16 %v1292_v23, %v1290_v56  ;;  %v1286_v40 = vmax.f32 %v1152_v32, 0.0  ;;  %v1281_v17 = vmax.f32 %v1138_v38, 0.0  ;;  %v1282_v24 = vmax.f32 %v1142_v35, 0.0 }
 0x25e   : > { %v1304_v3 = vmax.f32 %v1196_v27, 0.0  ;;  %v1198_v28 = vadd.f32 %v1197_v20, %v909_v0  ;;  %1560 = vmatprep.subr.bf16.mxu0 %v1363_v47  ;;  %v1144_v27 = vadd.f32 %v2743_v8, %v2713_v34  ;;  %v1284_v47 = vmax.f32 %v1146_v19, 0.0 }
 0x25f   : > { %v1201_v39 = vpop.f32.mrf.mxu1  ;;  %v1358_v15 = vpack.c.bf16 %v1288_v63, %v1286_v40 }
 0x260   : > { %v2795_v55 = vpack.c.bf16 %v1304_v3, %v1302_v48  ;;  %v1305_v2 = vmax.f32 %v1198_v28, 0.0  ;;  %v1202_v58 = vadd.f32 %v1201_v39, %v2774_v45  ;;  %v1283_v36 = vmax.f32 %v1144_v27, 0.0 }
 0x261   : > { %v1203_v11 = vpop.f32.mrf.mxu1  ;;  %1561 = vmatpush1.bf16.msra.mxu0 %v1362_v43  ;;  %v1278_v28 = vmax.f32 %v1132_v29, 0.0 }
 0x262   : > { %v2801_v33 = vpack.c.bf16 %v1305_v2, %v1303_v50  ;;  %1562 = vmatprep.subr.bf16.mxu0 %v1361_v14  ;;  %v1204_v0 = vadd.f32 %v1203_v11, %v2774_v45  ;;  %v1306_v5 = vmax.f32 %v1202_v58, 0.0  ;;  %v1136_v45 = vadd.f32 %v2733_v52, %v2719_v9 }
 0x263   : > { %v1205_v54 = vpop.f32.mrf.mxu1  ;;  %v1357_v51 = vpack.c.bf16 %v1285_v44, %v1283_v36  ;;  %v1356_v52 = vpack.c.bf16 %v1284_v47, %v1282_v24  ;;  %v3091_v24 = vld [vmem:[#allocation4_spill] sm:$0xff] }
 0x264   : > { %v1206_v8 = vadd.f32 %v1205_v54, %v2779_v18  ;;  %v1307_v25 = vmax.f32 %v1204_v0, 0.0  ;;  %v1280_v9 = vmax.f32 %v1136_v45, 0.0 }
 0x265   : > { %v1207_v41 = vpop.f32.mrf.mxu1  ;;  %1563 = vmatpush1.bf16.msra.mxu0 %v1360_v4 }
 0x266   : > { %v1308_v10 = vmax.f32 %v1206_v8, 0.0  ;;  %v1208_v37 = vadd.f32 %v1207_v41, %v2779_v18  ;;  %1564 = vmatprep.subr.bf16.mxu0 %v1359_v30  ;;  %v1279_v18 = vmax.f32 %v1134_v31, 0.0  ;;  %v1354_v26 = vpack.c.bf16 %v1280_v9, %v1278_v28 }
 0x267   : > { %v2817_v1 = vpop.f32.mrf.mxu1 }
 0x268   : > { %v2819_v34 = vpack.c.bf16 %v1308_v10, %v1306_v5  ;;  %v1309_v62 = vmax.f32 %v1208_v37, 0.0  ;;  %v1355_v3 = vpack.c.bf16 %v1281_v17, %v1279_v18 }
 0x269   : > { %v2823_v20 = vpop.f32.mrf.mxu1  ;;  %1565 = vmatpush1.bf16.msra.mxu0 %v1358_v15 }
 0x26a   : > { %v2825_v61 = vpack.c.bf16 %v1309_v62, %v1307_v25  ;;  %1566 = vmatprep.subr.bf16.mxu0 %v1357_v51 }
 0x26b   : > { %v2827_v48 = vpop.f32.mrf.mxu1 }
 0x26d   : > { %v2829_v7 = vpop.f32.mrf.mxu1  ;;  %1567 = vmatpush1.bf16.msra.mxu0 %v1356_v52 }
 0x26e   : > { %1568 = vmatprep.subr.bf16.mxu0 %v1355_v3 }
 0x26f   : > { %v2831_v6 = vpop.f32.mrf.mxu1 }
 0x271   : > { %v2833_v49 = vpop.f32.mrf.mxu1  ;;  %1569 = vmatpush1.bf16.msra.mxu0 %v1354_v26 }
 0x272   : > { %1570 = vmatprep.subr.bf16.mxu0 %v2731_v12 }
 0x273   : > { %v2836_v23 = vpop.f32.mrf.mxu1 }
 0x275   : > { %v1227_v43 = vpop.f32.mrf.mxu1  ;;  %1571 = vmatpush1.bf16.msra.mxu0 %v2727_v16 }
 0x276   : > { %1572 = vmatprep.subr.bf16.mxu0 %v2723_v46 }
 0x277   : > { %v1231_v39 = vpop.f32.mrf.mxu1 }
 0x279   : > { %v1233_v14 = vpop.f32.mrf.mxu1  ;;  %1573 = vmatpush1.bf16.msra.mxu0 %v2721_v22 }
 0x27b   : > { %v1235_v50 = vpop.f32.mrf.mxu1 }
 0x27d   : > { %v1237_v2 = vpop.f32.mrf.mxu1 }
 0x27f   : > { %v1241_v32 = vpop.f32.mrf.mxu1 }
 0x280   : > { %v1242_v62 = vadd.f32 %v1241_v32, %v2756_v57 }
 0x281   : > { %v1243_v56 = vpop.f32.mrf.mxu1 }
 0x282   : > { %v1244_v37 = vadd.f32 %v1243_v56, %v2756_v57 }
 0x283   : > { %v1245_v11 = vpop.f32.mrf.mxu1 }
 0x284   : > { %v1246_v17 = vadd.f32 %v1245_v11, %v2760_v60  ;;  %v1323_v18 = vmax.f32 %v1244_v37, 0.0  ;;  %v1322_v11 = vmax.f32 %v1242_v62, 0.0  ;;  %v2172_v37 = vld [vmem:[%s3070_s5 + $0x60] ss:$8 sps:$4 sm:$0xff]  }
 0x285   : > { %v1247_v27 = vpop.f32.mrf.mxu1 }
 0x286   : > { %v1248_v35 = vadd.f32 %v1247_v27, %v2760_v60  ;;  %v1324_v52 = vmax.f32 %v1246_v17, 0.0  ;;  %v3092_v60 = vld [vmem:[#allocation7_spill] sm:$0xff]  ;;  %v3093_v27 = vld [vmem:[#allocation6_spill] sm:$0xff]  ;;  %v3096_v17 = vmov 0  }
 0x287   : > { %v1251_v21 = vpop.f32.mrf.mxu1  ;;  %v1228_v28 = vadd.f32 %v1227_v43, %v3092_v60  ;;  %v1224_v57 = vadd.f32 %v2833_v49, %v3093_v27 }
 0x288   : > { %v1252_v5 = vadd.f32 %v1251_v21, %v2747_v13 }
 0x289   : > { %v1253_v58 = vpop.f32.mrf.mxu1  ;;  %v1317_v43 = vmax.f32 %v1228_v28, 0.0 }
 0x28a   : > { %v1254_v30 = vadd.f32 %v1253_v58, %v2747_v13  ;;  %v1326_v29 = vmax.f32 %v1252_v5, 0.0  ;;  %v1234_v13 = vadd.f32 %v1233_v14, %v3091_v24  ;;  %v1226_v14 = vadd.f32 %v2836_v23, %v3092_v60  ;;  %v3094_v58 = vld [vmem:[#allocation9_spill] sm:$0xff] }
 0x28b   : > { %v1255_v12 = vpop.f32.mrf.mxu1  ;;  %v1216_v23 = vadd.f32 %v2827_v48, %v3094_v58  ;;  %v2155_v48 = vld [vmem:[%s3070_s5 + $0x14] ss:$8 sps:$4 sm:$0xff]   ;;  %v2169_v5 = vld [vmem:[%s3070_s5 + $0x50] ss:$8 sps:$4 sm:$0xff]  }
 0x28c   : > { %v1256_v8 = vadd.f32 %v1255_v12, %v2749_v53  ;;  %v1327_v45 = vmax.f32 %v1254_v30, 0.0  ;;  %v1319_v32 = vmax.f32 %v1234_v13, 0.0  ;;  %v1218_v12 = vadd.f32 %v2829_v7, %v3094_v58 }
 0x28d   : > { %v1257_v38 = vpop.f32.mrf.mxu1  ;;  %v1312_v30 = vmax.f32 %v1216_v23, 0.0 }
 0x28e   : > { %v1258_v16 = vadd.f32 %v1257_v38, %v2749_v53  ;;  %v1328_v47 = vmax.f32 %v1256_v8, 0.0  ;;  %v1325_v53 = vmax.f32 %v1248_v35, 0.0  ;;  %v2163_v35 = vld [vmem:[%s3070_s5 + $0x30] ss:$8 sps:$4 sm:$0xff]  }
 0x28f   : > { %v1261_v19 = vpop.f32.mrf.mxu1 }
 0x290   : > { %v1262_v22 = vadd.f32 %v1261_v19, %v2737_v42  ;;  %v1329_v40 = vmax.f32 %v1258_v16, 0.0  ;;  %v1378_v3 = vpack.c.bf16 %v1328_v47, %v1326_v29  ;;  %v1377_v56 = vpack.c.bf16 %v1325_v53, %v1323_v18  ;;  %v2922_v47 = vpop.permute.xlu0 %1470 }
 0x291   : > { %v1263_v63 = vpop.f32.mrf.mxu1  ;;  %v1316_v16 = vmax.f32 %v1226_v14, 0.0 }
 0x292   : > { %v1264_v46 = vadd.f32 %v1263_v63, %v2737_v42  ;;  %v1330_v10 = vmax.f32 %v1262_v22, 0.0  ;;  %v1379_v25 = vpack.c.bf16 %v1329_v40, %v1327_v45  ;;  %v3095_v63 = vld [vmem:[#allocation8_spill] sm:$0xff]  ;;  %v2164_v40 = vld [vmem:[%s3070_s5 + $0x44] ss:$8 sps:$4 sm:$0xff]  }
 0x293   : > { %v1265_v4 = vpop.f32.mrf.mxu1  ;;  %v1214_v49 = vadd.f32 %v2823_v20, %v3095_v63  ;;  %v1212_v7 = vadd.f32 %v2817_v1, %v3095_v63  ;;  %v2152_v1 = vld [vmem:[%s3070_s5] ss:$8 sps:$4 sm:$0xff]   ;;  %v2173_v45 = vld [vmem:[%s3070_s5 + $0x74] ss:$8 sps:$4 sm:$0xff]  }
 0x294   : > { %v1266_v54 = vadd.f32 %v1265_v4, %v2741_v59  ;;  %v1331_v41 = vmax.f32 %v1264_v46, 0.0  ;;  %v1315_v4 = vmax.f32 %v1224_v57, 0.0 }
 0x295   : > { %v1267_v44 = vpop.f32.mrf.mxu1  ;;  %v1310_v20 = vmax.f32 %v1212_v7, 0.0 }
 0x296   : > { %v1268_v0 = vadd.f32 %v1267_v44, %v2741_v59  ;;  %v1332_v31 = vmax.f32 %v1266_v54, 0.0  ;;  %v3090_v59 = vld [vmem:[#allocation5_spill] sm:$0xff]  ;;  %v1313_v54 = vmax.f32 %v1218_v12, 0.0  ;;  %v1373_v22 = vpack.c.bf16 %v1317_v43, %v1315_v4 }
 0x297   : > { %v1238_v51 = vadd.f32 %v1237_v2, %v3090_v59  ;;  %v1236_v9 = vadd.f32 %v1235_v50, %v3090_v59  ;;  %v1232_v2 = vadd.f32 %v1231_v39, %v3091_v24  ;;  %v1376_v50 = vpack.c.bf16 %v1324_v52, %v1322_v11  ;;  %v2926_v59 = vpop.permute.xlu0 %1460 }
 0x298   : > { %v1333_v36 = vmax.f32 %v1268_v0, 0.0  ;;  %v1380_v15 = vpack.c.bf16 %v1332_v31, %v1330_v10  ;;  %v1222_v39 = vadd.f32 %v2831_v6, %v3093_v27  ;;  %v1311_v6 = vmax.f32 %v1214_v49, 0.0  ;;  %v2170_v10 = vld [vmem:[%s3070_s5 + $0x64] ss:$8 sps:$4 sm:$0xff]  }
 0x299   : > { %v1321_v26 = vmax.f32 %v1238_v51, 0.0  ;;  %v1320_v21 = vmax.f32 %v1236_v9, 0.0  ;;  %v1318_v19 = vmax.f32 %v1232_v2, 0.0  ;;  %v1370_v31 = vpack.c.bf16 %v1312_v30, %v1310_v20 }
 0x29a   : > { %v1381_v42 = vpack.c.bf16 %v1333_v36, %v1331_v41  ;;  %v1314_v44 = vmax.f32 %v1222_v39, 0.0  ;;  %v1371_v8 = vpack.c.bf16 %v1313_v54, %v1311_v6  ;;  %v2166_v41 = vld [vmem:[%s3070_s5 + $0x40] ss:$8 sps:$4 sm:$0xff]   ;;  %v2167_v36 = vld [vmem:[%s3070_s5 + $0x54] ss:$8 sps:$4 sm:$0xff]  }
 0x29b   : > { %v1375_v38 = vpack.c.bf16 %v1321_v26, %v1319_v32  ;;  %v1374_v46 = vpack.c.bf16 %v1320_v21, %v1318_v19  ;;  %v2930_v53 = vpop.permute.xlu0 %1450 }
 0x29c   : > { %1574 = vmatprep.subr.bf16.mxu0 %v1381_v42  ;;  %v1372_v0 = vpack.c.bf16 %v1316_v16, %v1314_v44  ;;  %v2175_v42 = vld [vmem:[%s3070_s5 + $0x70] ss:$8 sps:$4 sm:$0xff]  }
 0x29d   : > { %1575 = vmatpush2.bf16.msra.mxu0 %v1380_v15  ;;  %v2924_v15 = vpop.permute.xlu1 %1475 }
 0x29e   : > { %1576 = vmatprep.subr.bf16.mxu0 %v1379_v25 }
 0x29f   : > { %v2934_v62 = vpop.permute.xlu0 %1440 }
 0x2a1   : > { %1577 = vmatpush2.bf16.msra.mxu0 %v1378_v3  ;;  %v2928_v51 = vpop.permute.xlu1 %1465 }
 0x2a2   : > { %1578 = vmatprep.subr.bf16.mxu0 %v1377_v56 }
 0x2a3   : > { %v2938_v24 = vpop.permute.xlu0 %1430 }
 0x2a5   : > { %1579 = vmatpush2.bf16.msra.mxu0 %v1376_v50  ;;  %v2932_v25 = vpop.permute.xlu1 %1455 }
 0x2a6   : > { %1580 = vmatprep.subr.bf16.mxu0 %v1375_v38 }
 0x2a7   : > { %v2942_v18 = vpop.permute.xlu0 %1420 }
 0x2a9   : > { %1581 = vmatpush2.bf16.msra.mxu0 %v1374_v46  ;;  %v2936_v29 = vpop.permute.xlu1 %1445 }
 0x2aa   : > { %1582 = vmatprep.subr.bf16.mxu0 %v1373_v22 }
 0x2ab   : > { %v1411_v52 = vpop.permute.xlu0 %1410 }
 0x2ad   : > { %1583 = vmatpush2.bf16.msra.mxu0 %v1372_v0  ;;  %v2940_v13 = vpop.permute.xlu1 %1435 }
 0x2ae   : > { %1584 = vmatprep.subr.bf16.mxu0 %v1371_v8 }
 0x2af   : > { %v1401_v28 = vpop.permute.xlu0 %1400 }
 0x2b1   : > { %1585 = vmatpush2.bf16.msra.mxu0 %v1370_v31  ;;  %v2944_v9 = vpop.permute.xlu1 %1425 }
 0x2b2   : > { %1586 = vmatprep.subr.bf16.mxu0 %v2825_v61  ;;  %v2157_v61 = vld [vmem:[%s3070_s5 + $0x10] ss:$8 sps:$4 sm:$0xff]  }
 0x2b5   : > { %1587 = vmatpush2.bf16.msra.mxu0 %v2819_v34  ;;  %v2161_v34 = vld [vmem:[%s3070_s5 + $0x34] ss:$8 sps:$4 sm:$0xff]   ;;  %v1416_v3 = vpop.permute.xlu1 %1415 }
 0x2b6   : > { %1588 = vmatprep.subr.bf16.mxu0 %v2801_v33  ;;  %v2158_v33 = vld [vmem:[%s3070_s5 + $0x24] ss:$8 sps:$4 sm:$0xff]  }
 0x2b9   : > { %1589 = vmatpush2.bf16.msra.mxu0 %v2795_v55  ;;  %v2160_v55 = vld [vmem:[%s3070_s5 + $0x20] ss:$8 sps:$4 sm:$0xff]   ;;  %v1406_v2 = vpop.permute.xlu1 %1405 }
 0x2bc   : > { %1591 = vmatmul.mubr.bf16.vlgmr.msra.gmra.mxu0 %v2152_v1 }
 0x2bd   : > { %1600 = vmatprep.mubr.bf16.mxu0 %v2155_v48 }
 0x2c4   : > { %1601 = vmatmul.mubr.bf16.gmra.mxu0 %v2157_v61 }
 0x2c5   : > { %1610 = vmatprep.mubr.bf16.mxu0 %v2158_v33 }
 0x2cc   : > { %1611 = vmatmul.mubr.bf16.gmra.mxu0 %v2160_v55 }
 0x2cd   : > { %1620 = vmatprep.mubr.bf16.mxu0 %v2161_v34 }
 0x2d4   : > { %1621 = vmatmul.mubr.bf16.gmra.mxu0 %v2163_v35 }
 0x2d5   : > { %1630 = vmatprep.mubr.bf16.mxu0 %v2164_v40 }
 0x2dc   : > { %1631 = vmatmul.mubr.bf16.gmra.mxu0 %v2166_v41 }
 0x2dd   : > { %1640 = vmatprep.mubr.bf16.mxu0 %v2167_v36 }
 0x2e4   : > { %1641 = vmatmul.mubr.bf16.gmra.mxu0 %v2169_v5 }
 0x2e5   : > { %1650 = vmatprep.mubr.bf16.mxu0 %v2170_v10 }
 0x2ec   : > { %1651 = vmatmul.mubr.bf16.gmra.mxu0 %v2172_v37 }
 0x2ed   : > { %1660 = vmatprep.mubr.bf16.mxu0 %v2173_v45 }
 0x2f4   : > { %1661 = vmatmul.mubr.bf16.gmra.mxu0 %v2175_v42 }
 0x2f5   : > { %1831 = vmatprep.mubr.bf16.mxu0 %v3096_v17 }
 0x37c   : > { %v1592_v60 = vpop.f32.mrf.mxu0 }
 0x37d   : > { %v1593_v56 = vadd.f32 %v1592_v60, %v1401_v28 }
 0x37e   : > { %v1594_v26 = vpop.f32.mrf.mxu0 }
 0x37f   : > { %v1595_v27 = vadd.f32 %v1594_v26, %v1401_v28  ;;  %v1671_v14 = vmax.f32 %v1593_v56, 0.0 }
 0x380   : > { %v1596_v11 = vpop.f32.mrf.mxu0 }
 0x381   : > { %v1597_v57 = vadd.f32 %v1596_v11, %v1406_v2  ;;  %v1672_v12 = vmax.f32 %v1595_v27, 0.0 }
 0x382   : > { %v1598_v32 = vpop.f32.mrf.mxu0 }
 0x383   : > { %v1673_v21 = vmax.f32 %v1597_v57, 0.0  ;;  %v1599_v50 = vadd.f32 %v1598_v32, %v1406_v2 }
 0x384   : > { %v1602_v58 = vpop.f32.mrf.mxu0 }
 0x385   : > { %v2946_v43 = vpack.c.bf16 %v1673_v21, %v1671_v14  ;;  %v1674_v38 = vmax.f32 %v1599_v50, 0.0  ;;  %v1603_v63 = vadd.f32 %v1602_v58, %v1411_v52 }
 0x386   : > { %v1604_v39 = vpop.f32.mrf.mxu0 }
 0x387   : > { %v2948_v19 = vpack.c.bf16 %v1674_v38, %v1672_v12  ;;  %v1605_v4 = vadd.f32 %v1604_v39, %v1411_v52  ;;  %v1675_v46 = vmax.f32 %v1603_v63, 0.0 }
 0x388   : > { %v1606_v49 = vpop.f32.mrf.mxu0 }
 0x389   : > { %v1607_v23 = vadd.f32 %v1606_v49, %v1416_v3  ;;  %v1676_v44 = vmax.f32 %v1605_v4, 0.0 }
 0x38a   : > { %v1608_v16 = vpop.f32.mrf.mxu0 }
 0x38b   : > { %v1677_v54 = vmax.f32 %v1607_v23, 0.0  ;;  %v1609_v22 = vadd.f32 %v1608_v16, %v1416_v3 }
 0x38c   : > { %v2950_v7 = vpop.f32.mrf.mxu0 }
 0x38d   : > { %v2952_v6 = vpack.c.bf16 %v1677_v54, %v1675_v46  ;;  %v1678_v30 = vmax.f32 %v1609_v22, 0.0 }
 0x38e   : > { %v2954_v0 = vpop.f32.mrf.mxu0 }
 0x38f   : > { %v2956_v8 = vpack.c.bf16 %v1678_v30, %v1676_v44 }
 0x390   : > { %v2958_v20 = vpop.f32.mrf.mxu0 }
 0x392   : > { %v2960_v31 = vpop.f32.mrf.mxu0 }
 0x394   : > { %v2962_v1 = vpop.f32.mrf.mxu0 }
 0x396   : > { %v1624_v48 = vpop.f32.mrf.mxu0 }
 0x398   : > { %v1626_v61 = vpop.f32.mrf.mxu0 }
 0x39a   : > { %v1628_v33 = vpop.f32.mrf.mxu0 }
 0x39c   : > { %v1632_v55 = vpop.f32.mrf.mxu0 }
 0x39e   : > { %v1634_v34 = vpop.f32.mrf.mxu0 }
 0x3a0   : > { %v1636_v35 = vpop.f32.mrf.mxu0 }
 0x3a2   : > { %v1638_v40 = vpop.f32.mrf.mxu0 }
 0x3a4   : > { %v1642_v41 = vpop.f32.mrf.mxu0 }
 0x3a5   : > { %v1643_v22 = vadd.f32 %v1642_v41, %v2930_v53 }
 0x3a6   : > { %v1644_v36 = vpop.f32.mrf.mxu0 }
 0x3a7   : > { %v1645_v49 = vadd.f32 %v1644_v36, %v2930_v53  ;;  %v1637_v36 = vadd.f32 %v1636_v35, %v2936_v29  ;;  %v1625_v53 = vadd.f32 %v1624_v48, %v2938_v24 }
 0x3a8   : > { %v1646_v5 = vpop.f32.mrf.mxu0 }
 0x3a9   : > { %v1647_v23 = vadd.f32 %v1646_v5, %v2932_v25  ;;  %v1692_v30 = vmax.f32 %v1645_v49, 0.0  ;;  %v1684_v48 = vmax.f32 %v1625_v53, 0.0 }
 0x3aa   : > { %v1648_v10 = vpop.f32.mrf.mxu0 }
 0x3ab   : > { %v1649_v50 = vadd.f32 %v1648_v10, %v2932_v25  ;;  %v1693_v10 = vmax.f32 %v1647_v23, 0.0  ;;  %v1629_v25 = vadd.f32 %v1628_v33, %v2940_v13  ;;  %v1623_v33 = vadd.f32 %v2962_v1, %v2938_v24 }
 0x3ac   : > { %v1652_v37 = vpop.f32.mrf.mxu0 }
 0x3ad   : > { %v1653_v39 = vadd.f32 %v1652_v37, %v2926_v59  ;;  %v1686_v35 = vmax.f32 %v1629_v25, 0.0 }
 0x3ae   : > { %v1654_v45 = vpop.f32.mrf.mxu0 }
 0x3af   : > { %v1655_v57 = vadd.f32 %v1654_v45, %v2926_v59  ;;  %v1695_v44 = vmax.f32 %v1653_v39, 0.0  ;;  %v1635_v59 = vadd.f32 %v1634_v34, %v2934_v62  ;;  %v1627_v34 = vadd.f32 %v1626_v61, %v2940_v13 }
 0x3b0   : > { %v1656_v42 = vpop.f32.mrf.mxu0  ;;  %v1617_v13 = vadd.f32 %v2958_v20, %v2944_v9 }
 0x3b1   : > { %v1657_v14 = vadd.f32 %v1656_v42, %v2928_v51  ;;  %v1696_v4 = vmax.f32 %v1655_v57, 0.0  ;;  %v1691_v42 = vmax.f32 %v1643_v22, 0.0  ;;  %v1688_v41 = vmax.f32 %v1635_v59, 0.0 }
 0x3b2   : > { %v1658_v52 = vpop.f32.mrf.mxu0  ;;  %v1685_v61 = vmax.f32 %v1627_v34, 0.0  ;;  %v1681_v1 = vmax.f32 %v1617_v13, 0.0 }
 0x3b3   : > { %v1659_v26 = vadd.f32 %v1658_v52, %v2928_v51  ;;  %v1697_v16 = vmax.f32 %v1657_v14, 0.0  ;;  %v1694_v51 = vmax.f32 %v1649_v50, 0.0  ;;  %v1689_v52 = vmax.f32 %v1637_v36, 0.0 }
 0x3b4   : > { %v1662_v3 = vpop.f32.mrf.mxu0 }
 0x3b5   : > { %v1663_v11 = vadd.f32 %v1662_v3, %v2922_v47  ;;  %v1698_v58 = vmax.f32 %v1659_v26, 0.0  ;;  %v1723_v37 = vpack.c.bf16 %v1697_v16, %v1695_v44  ;;  %v1722_v45 = vpack.c.bf16 %v1694_v51, %v1692_v30 }
 0x3b6   : > { %v1664_v60 = vpop.f32.mrf.mxu0  ;;  %v1721_v3 = vpack.c.bf16 %v1693_v10, %v1691_v42 }
 0x3b7   : > { %v1665_v56 = vadd.f32 %v1664_v60, %v2922_v47  ;;  %v1699_v63 = vmax.f32 %v1663_v11, 0.0  ;;  %v1724_v54 = vpack.c.bf16 %v1698_v58, %v1696_v4 }
 0x3b8   : > { %v1666_v28 = vpop.f32.mrf.mxu0 }
 0x3b9   : > { %v1667_v2 = vadd.f32 %v1666_v28, %v2924_v15  ;;  %v1700_v12 = vmax.f32 %v1665_v56, 0.0  ;;  %v1718_v56 = vpack.c.bf16 %v1686_v35, %v1684_v48 }
 0x3ba   : > { %v1668_v27 = vpop.f32.mrf.mxu0 }
 0x3bb   : > { %v1669_v32 = vadd.f32 %v1668_v27, %v2924_v15  ;;  %v1701_v21 = vmax.f32 %v1667_v2, 0.0  ;;  %v1639_v15 = vadd.f32 %v1638_v40, %v2936_v29  ;;  %v1633_v40 = vadd.f32 %v1632_v55, %v2934_v62 }
 0x3bc   : > { %v1619_v29 = vadd.f32 %v2960_v31, %v2944_v9  ;;  %v1615_v62 = vadd.f32 %v2954_v0, %v2942_v18  ;;  %v1613_v31 = vadd.f32 %v2950_v7, %v2942_v18  ;;  %v1683_v2 = vmax.f32 %v1623_v33, 0.0  ;;  %v2176_v18 = vld [vmem:[%s3072_s7] sm:$0xff]   ;;  %v2177_v9 = vld [vmem:[%s3072_s7 + $0x8] sm:$0xff]   ;;  %v1738_v7 = vpop.permute.xlu0 %1737 }
 0x3bd   : > { %v1702_v38 = vmax.f32 %v1669_v32, 0.0  ;;  %v1725_v46 = vpack.c.bf16 %v1701_v21, %v1699_v63  ;;  %v1690_v5 = vmax.f32 %v1639_v15, 0.0  ;;  %v1687_v28 = vmax.f32 %v1633_v40, 0.0  ;;  %v1743_v21 = vpop.permute.xlu1 %1742 }
 0x3be   : > { %v1682_v26 = vmax.f32 %v1619_v29, 0.0  ;;  %v1680_v24 = vmax.f32 %v1615_v62, 0.0  ;;  %v1717_v11 = vpack.c.bf16 %v1685_v61, %v1683_v2  ;;  %v1679_v0 = vmax.f32 %v1613_v31, 0.0 }
 0x3bf   : > { %v1726_v47 = vpack.c.bf16 %v1702_v38, %v1700_v12  ;;  %v1720_v60 = vpack.c.bf16 %v1690_v5, %v1688_v41  ;;  %v1719_v55 = vpack.c.bf16 %v1689_v52, %v1687_v28 }
 0x3c0   : > { %v1716_v27 = vpack.c.bf16 %v1682_v26, %v1680_v24  ;;  %v1715_v57 = vpack.c.bf16 %v1681_v1, %v1679_v0  ;;  %v1748_v63 = vpop.permute.xlu0 %1747 }
 0x3c1   : > { %1799 = vmatprep.subr.bf16.mxu0 %v1726_v47  ;;  %v1753_v15 = vpop.permute.xlu1 %1752 }
 0x3c2   : > { %1800 = vmatpush1.bf16.msra.mxu0 %v1725_v46 }
 0x3c3   : > { %1801 = vmatprep.subr.bf16.mxu0 %v1724_v54 }
 0x3c4   : > { %v1758_v36 = vpop.permute.xlu0 %1757 }
 0x3c5   : > { %v1763_v42 = vpop.permute.xlu1 %1762 }
 0x3c6   : > { %1802 = vmatpush1.bf16.msra.mxu0 %v1723_v37 }
 0x3c7   : > { %1803 = vmatprep.subr.bf16.mxu0 %v1722_v45 }
 0x3c8   : > { %v1768_v35 = vpop.permute.xlu0 %1767 }
 0x3c9   : > { %v1773_v61 = vpop.permute.xlu1 %1772 }
 0x3ca   : > { %1804 = vmatpush1.bf16.msra.mxu0 %v1721_v3 }
 0x3cb   : > { %1805 = vmatprep.subr.bf16.mxu0 %v1720_v60 }
 0x3ce   : > { %1806 = vmatpush1.bf16.msra.mxu0 %v1719_v55 }
 0x3cf   : > { %1807 = vmatprep.subr.bf16.mxu0 %v1718_v56 }
 0x3d2   : > { %1808 = vmatpush1.bf16.msra.mxu0 %v1717_v11 }
 0x3d3   : > { %1809 = vmatprep.subr.bf16.mxu0 %v1716_v27 }
 0x3d6   : > { %1810 = vmatpush1.bf16.msra.mxu0 %v1715_v57 }
 0x3d7   : > { %1811 = vmatprep.subr.bf16.mxu0 %v2956_v8 }
 0x3da   : > { %1812 = vmatpush1.bf16.msra.mxu0 %v2952_v6 }
 0x3db   : > { %1813 = vmatprep.subr.bf16.mxu0 %v2948_v19  ;;  %v2178_v19 = vld [vmem:[%s3072_s7 + $0x10] sm:$0xff]  }
 0x3de   : > { %1814 = vmatpush1.bf16.msra.mxu0 %v2946_v43  ;;  %v2179_v43 = vld [vmem:[%s3072_s7 + $0x18] sm:$0xff]  }
 0x3e1   : > { %1832 = vmatmul.mubr.bf16.vlgmr.msra.gmra.mxu0 %v2176_v18 }
 0x3e2   : > { %1841 = vmatprep.mubr.bf16.mxu0 %v3096_v17 }
 0x3e9   : > { %1842 = vmatmul.mubr.bf16.gmra.mxu0 %v2177_v9 }
 0x3ea   : > { %1851 = vmatprep.mubr.bf16.mxu0 %v3096_v17 }
 0x3f1   : > { %1852 = vmatmul.mubr.bf16.gmra.mxu0 %v2178_v19 }
 0x3f2   : > { %1861 = vmatprep.mubr.bf16.mxu0 %v3096_v17 }
 0x3f9   : > { %1862 = vmatmul.mubr.bf16.gmra.mxu0 %v2179_v43 }
 0x4a1   : > { %v1833_v6 = vpop.f32.mrf.mxu0 }
 0x4a2   : > { %v1834_v8 = vadd.f32 %v1833_v6, %v1738_v7 }
 0x4a3   : > { %v1835_v20 = vpop.f32.mrf.mxu0 }
 0x4a4   : > { %v1872_v32 = vmax.f32 %v1834_v8, 0.0  ;;  %v1836_v14 = vadd.f32 %v1835_v20, %v1738_v7 }
 0x4a5   : > { %v1837_v50 = vpop.f32.mrf.mxu0 }
 0x4a6   : > { %1888 = vst [vmem:[%s3014_s26] sm:$0xff] %v1872_v32  ;;  %v1873_v17 = vmax.f32 %v1836_v14, 0.0  ;;  %v1838_v58 = vadd.f32 %v1837_v50, %v1743_v21 }
 0x4a7   : > { %v1839_v12 = vpop.f32.mrf.mxu0 }
 0x4a8   : > { %1889 = vst [vmem:[%s3014_s26 + $0x8] sm:$0xff] %v1873_v17  ;;  %v1874_v38 = vmax.f32 %v1838_v58, 0.0  ;;  %v1840_v39 = vadd.f32 %v1839_v12, %v1743_v21 }
 0x4a9   : > { %v1843_v49 = vpop.f32.mrf.mxu0 }
 0x4aa   : > { %1890 = vst [vmem:[%s3014_s26 + $0x10] sm:$0xff] %v1874_v38  ;;  %v1875_v4 = vmax.f32 %v1840_v39, 0.0  ;;  %v1844_v47 = vadd.f32 %v1843_v49, %v1748_v63 }
 0x4ab   : > { %v1845_v23 = vpop.f32.mrf.mxu0 }
 0x4ac   : > { %1891 = vst [vmem:[%s3014_s26 + $0x18] sm:$0xff] %v1875_v4  ;;  %v1876_v16 = vmax.f32 %v1844_v47, 0.0  ;;  %v1846_v46 = vadd.f32 %v1845_v23, %v1748_v63 }
 0x4ad   : > { %v1847_v51 = vpop.f32.mrf.mxu0  ;;  %v1926_v11 = vld [vmem:[%s3014_s26] sm:$0xff] (%p2285_p5) }
 0x4ae   : > { %1892 = vst [vmem:[%s3014_s26 + $0x20] sm:$0xff] %v1876_v16  ;;  %v1877_v54 = vmax.f32 %v1846_v46, 0.0  ;;  %v1848_v22 = vadd.f32 %v1847_v51, %v1753_v15  ;;  %1927 = vst [vmem:[%s1913_s17] sm:$0xff] (%p2285_p5), %v1926_v11 }
 0x4af   : > { %v1849_v44 = vpop.f32.mrf.mxu0  ;;  %v1928_v27 = vld [vmem:[%s3014_s26 + $0x8] sm:$0xff] (%p2285_p5) }
 0x4b0   : > { %1893 = vst [vmem:[%s3014_s26 + $0x28] sm:$0xff] %v1877_v54  ;;  %v1878_v59 = vmax.f32 %v1848_v22, 0.0  ;;  %v1850_v30 = vadd.f32 %v1849_v44, %v1753_v15  ;;  %1929 = vst [vmem:[%s1913_s17 + $0x8] sm:$0xff] (%p2285_p5), %v1928_v27 }
 0x4b1   : > { %v1853_v10 = vpop.f32.mrf.mxu0  ;;  %v1930_v0 = vld [vmem:[%s3014_s26 + $0x10] sm:$0xff] (%p2285_p5) }
 0x4b2   : > { %1894 = vst [vmem:[%s3014_s26 + $0x30] sm:$0xff] %v1878_v59  ;;  %v1879_v37 = vmax.f32 %v1850_v30, 0.0  ;;  %v1854_v25 = vadd.f32 %v1853_v10, %v1758_v36  ;;  %1931 = vst [vmem:[%s1913_s17 + $0x20] sm:$0xff] (%p2285_p5), %v1930_v0 }
 0x4b3   : > { %v1855_v5 = vpop.f32.mrf.mxu0  ;;  %v1932_v57 = vld [vmem:[%s3014_s26 + $0x18] sm:$0xff] (%p2285_p5) }
 0x4b4   : > { %1895 = vst [vmem:[%s3014_s26 + $0x38] sm:$0xff] %v1879_v37  ;;  %v1880_v45 = vmax.f32 %v1854_v25, 0.0  ;;  %v1856_v40 = vadd.f32 %v1855_v5, %v1758_v36  ;;  %1933 = vst [vmem:[%s1913_s17 + $0x28] sm:$0xff] (%p2285_p5), %v1932_v57 }
 0x4b5   : > { %v1857_v53 = vpop.f32.mrf.mxu0  ;;  %v1934_v18 = vld [vmem:[%s3014_s26 + $0x20] sm:$0xff] (%p2285_p5) }
 0x4b6   : > { %1896 = vst [vmem:[%s3014_s26 + $0x40] sm:$0xff] %v1880_v45  ;;  %v1881_v41 = vmax.f32 %v1856_v40, 0.0  ;;  %v1858_v34 = vadd.f32 %v1857_v53, %v1763_v42  ;;  %1935 = vst [vmem:[%s1913_s17 + $0x40] sm:$0xff] (%p2285_p5), %v1934_v18 }
 0x4b7   : > { %v1859_v52 = vpop.f32.mrf.mxu0  ;;  %v1936_v9 = vld [vmem:[%s3014_s26 + $0x28] sm:$0xff] (%p2285_p5) }
 0x4b8   : > { %1897 = vst [vmem:[%s3014_s26 + $0x48] sm:$0xff] %v1881_v41  ;;  %v1882_v3 = vmax.f32 %v1858_v34, 0.0  ;;  %v1860_v29 = vadd.f32 %v1859_v52, %v1763_v42  ;;  %1937 = vst [vmem:[%s1913_s17 + $0x48] sm:$0xff] (%p2285_p5), %v1936_v9 }
 0x4b9   : > { %v1863_v60 = vpop.f32.mrf.mxu0  ;;  %v1938_v19 = vld [vmem:[%s3014_s26 + $0x30] sm:$0xff] (%p2285_p5) }
 0x4ba   : > { %1898 = vst [vmem:[%s3014_s26 + $0x50] sm:$0xff] %v1882_v3  ;;  %v1883_v33 = vmax.f32 %v1860_v29, 0.0  ;;  %v1864_v28 = vadd.f32 %v1863_v60, %v1768_v35  ;;  %1939 = vst [vmem:[%s1913_s17 + $0x60] sm:$0xff] (%p2285_p5), %v1938_v19 }
 0x4bb   : > { %v1865_v62 = vpop.f32.mrf.mxu0  ;;  %v1940_v43 = vld [vmem:[%s3014_s26 + $0x38] sm:$0xff] (%p2285_p5) }
 0x4bc   : > { %1899 = vst [vmem:[%s3014_s26 + $0x58] sm:$0xff] %v1883_v33  ;;  %v1884_v48 = vmax.f32 %v1864_v28, 0.0  ;;  %v1866_v13 = vadd.f32 %v1865_v62, %v1768_v35  ;;  %1941 = vst [vmem:[%s1913_s17 + $0x68] sm:$0xff] (%p2285_p5), %v1940_v43 }
 0x4bd   : > { %v1867_v55 = vpop.f32.mrf.mxu0  ;;  %v1942_v7 = vld [vmem:[%s3014_s26 + $0x40] sm:$0xff] (%p2285_p5) }
 0x4be   : > { %1900 = vst [vmem:[%s3014_s26 + $0x60] sm:$0xff] %v1884_v48  ;;  %v1885_v26 = vmax.f32 %v1866_v13, 0.0  ;;  %v1868_v56 = vadd.f32 %v1867_v55, %v1773_v61  ;;  %1943 = vst [vmem:[%s1913_s17 + $0x80] sm:$0xff] (%p2285_p5), %v1942_v7 }
 0x4bf   : > { %v1869_v31 = vpop.f32.mrf.mxu0  ;;  %v1944_v6 = vld [vmem:[%s3014_s26 + $0x48] sm:$0xff] (%p2285_p5) }
 0x4c0   : > { %1901 = vst [vmem:[%s3014_s26 + $0x68] sm:$0xff] %v1885_v26  ;;  %v1886_v2 = vmax.f32 %v1868_v56, 0.0  ;;  %v1870_v24 = vadd.f32 %v1869_v31, %v1773_v61  ;;  %1910 = sbr.rel (!%p2285_p5) target bundleno = 1229 (0x4cd), region = 98  ;;  %1945 = vst [vmem:[%s1913_s17 + $0x88] sm:$0xff] (%p2285_p5), %v1944_v6 }
 0x4c1   : > { %v1946_v8 = vld [vmem:[%s3014_s26 + $0x50] sm:$0xff] (%p2285_p5) }
 0x4c2   : > { %1902 = vst [vmem:[%s3014_s26 + $0x70] sm:$0xff] %v1886_v2  ;;  %v1887_v1 = vmax.f32 %v1870_v24, 0.0  ;;  %1947 = vst [vmem:[%s1913_s17 + $0xa0] sm:$0xff] (%p2285_p5), %v1946_v8 }
 0x4c3   : > { %v1948_v20 = vld [vmem:[%s3014_s26 + $0x58] sm:$0xff] (%p2285_p5) }
 0x4c4   : > { %1903 = vst [vmem:[%s3014_s26 + $0x78] sm:$0xff] %v1887_v1  ;;  %1949 = vst [vmem:[%s1913_s17 + $0xa8] sm:$0xff] (%p2285_p5), %v1948_v20 }
 0x4c5   : > { %v1950_v32 = vld [vmem:[%s3014_s26 + $0x60] sm:$0xff] }
 0x4c6   : > { %1951 = vst [vmem:[%s1913_s17 + $0xc0] sm:$0xff] %v1950_v32 }
 0x4c7   : > { %v1952_v14 = vld [vmem:[%s3014_s26 + $0x68] sm:$0xff] }
 0x4c8   : > { %1953 = vst [vmem:[%s1913_s17 + $0xc8] sm:$0xff] %v1952_v14 }
 0x4c9   : > { %v1954_v21 = vld [vmem:[%s3014_s26 + $0x70] sm:$0xff] }
 0x4ca   : > { %1955 = vst [vmem:[%s1913_s17 + $0xe0] sm:$0xff] %v1954_v21 }
 0x4cb   : > { %v1956_v50 = vld [vmem:[%s3014_s26 + $0x78] sm:$0xff] }
 0x4cc   : > { %1957 = vst [vmem:[%s1913_s17 + $0xe8] sm:$0xff] %v1956_v50 }
 0x4cd PF: > { %p16_p10 = scmp.ge.s32.totalorder %s2272_s13, 4   ;;  %s3097_s30 = smov %s2198_s10 }
 0x4ce   : > { %s3098_s10 = smov %s2283_s16  ;;  %s3099_s11 = smov %s2272_s13 }
 0x4cf   :  { %18 = sbr.rel (!%p16_p10) target bundleno = 2 (0x2), region = 152 }

</bundles_post_ra>
